<compile_context>
chip_gen: v7x
topology: tpu7x:2x2x1
jax: 0.10.0
libtpu: 0.0.40
codegen_flags: <defaults>
</compile_context>

<pallas_src>
import functools

import jax
import jax.numpy as jnp
from jax import lax
from jax.experimental import pallas as pl
from jax.experimental.pallas import tpu as pltpu

INVERT_SIDE_ACTIONS = jnp.array([1.0, -1.0, 1.0, -1.0, -1.0, 1.0, 1.0, 1.0],
                                dtype=jnp.float32)


def _round_up(x, m):
    return (x + m - 1) // m * m


def _controls_mlp_kernel(flip_ref,                    # SMEM [B_pad] int32 (prefetch)
                         pe_ref, act_ref,             # VMEM streams
                         w1a_ref, w1af_ref,
                         w2_ref, b2_ref,
                         w3_ref, b3_ref,
                         out_ref,
                         *, tile_batch):
    """One (batch-tile, action-tile) block of the ControlsPredictorLinear MLP.

    pe_ref   : [TB, F, 1]  precomputed player_emb @ W1p + b1 (f32), one column/row
    act_ref  : [TB, 8, TA] actions, features-major (action index in lanes)
    w1a_ref  : [F, 8]      W1a^T                       (f32 or bf16)
    w1af_ref : [F, 8]      (W1a * invert_side)^T       (flip-folded copy)
    w2/w3    : [F, F]/[1, F] transposed layer-2/3 weights (f32)
    out_ref  : [TB, TA]    lane-dense, sublane-dense output block
    """
    b0 = pl.program_id(0) * tile_batch

    w1a = w1a_ref[...]                        # [F, 8]
    w1af = w1af_ref[...]                      # [F, 8]
    w2 = w2_ref[...]                          # [F, F] f32
    b2 = b2_ref[...]                          # [F, 1] f32
    w3 = w3_ref[...]                          # [1, F] f32
    b3 = b3_ref[...]                          # [1, 1] f32

    rows = []
    for r in range(tile_batch):               # fully unrolled (static trip count)
        f = flip_ref[b0 + r] != 0                                 # SMEM scalar
        w1_row = jnp.where(f, w1af, w1a)                          # [F, 8] select
        act = act_ref[r]                                          # [8, TA]
        pe_col = pe_ref[r]                                        # [F, 1] f32 (bias folded)

        h1 = jnp.dot(w1_row, act,
                     preferred_element_type=jnp.float32) + pe_col  # [F, TA] f32
        a1 = jnp.maximum(h1, 0.0)                                  # ReLU
        h2 = jnp.dot(w2, a1, preferred_element_type=jnp.float32) + b2
        a2 = jnp.maximum(h2, 0.0)                                  # ReLU
        y = jnp.dot(w3, a2, preferred_element_type=jnp.float32) + b3  # [1, TA]
        rows.append(y)

    # Single dense (TB, TA) store per grid step (unmasked, lane-dense).
    out_ref[...] = jnp.concatenate(rows, axis=0)


def controls_predictor_linear(player_emb, actions, flip, params, *,
                              tile_actions=1024, tile_batch=16, use_bf16=False):
    """player_emb: [B, in_features] f32; actions: [B, A, 8] f32; flip: [B] bool.

    Returns [B, A] f32, matching ControlsPredictorLinear.forward.
    """
    w1p, w1a, b1, w2, b2, w3, b3 = params
    B, _ = player_emb.shape
    A = actions.shape[1]
    F = w2.shape[0]

    # Batch tiling: multiple of 8 (sublane-dense output block).
    tb = min(_round_up(tile_batch, 8), _round_up(B, 8))
    b_pad = _round_up(B, tb)
    # Action tiling: lane-dense (multiple of 128), zero-padded.
    a_pad = _round_up(A, 128)
    ta = min(_round_up(tile_actions, 128), a_pad)
    a_pad = _round_up(a_pad, ta)

    act_dt = jnp.bfloat16 if use_bf16 else jnp.float32

    # Hoisted player projection + layer-1 bias: one dense XLA matmul, exact f32.
    pe_proj = (jnp.dot(player_emb, w1p, precision=lax.Precision.HIGHEST)
               + b1.reshape(1, F)).astype(jnp.float32)                     # [B, F]
    pe_proj = jnp.pad(pe_proj, ((0, b_pad - B), (0, 0)))[:, :, None]       # [B_pad, F, 1]

    # First-layer action weights, flip folded in as a second copy (exact: +/-1).
    w1a_t = w1a.T.astype(act_dt)                                           # [F, 8]
    w1a_flip_t = (w1a * INVERT_SIDE_ACTIONS[:, None]).T.astype(act_dt)     # [F, 8]

    w2_t = w2.T.astype(jnp.float32)                                        # [F, F]
    w3_t = w3.T.astype(jnp.float32)                                        # [1, F]
    b2_t = b2.reshape(F, 1).astype(jnp.float32)
    b3_t = b3.reshape(1, 1).astype(jnp.float32)

    # Actions features-major so the action index lives in lanes.
    act_t = jnp.transpose(actions, (0, 2, 1)).astype(act_dt)               # [B, 8, A]
    act_t = jnp.pad(act_t, ((0, b_pad - B), (0, 0), (0, a_pad - A)))
    flip_i = jnp.pad(flip.astype(jnp.int32), (0, b_pad - B))               # [B_pad]

    grid = (b_pad // tb, a_pad // ta)
    const = lambda r, c: pl.BlockSpec((r, c), lambda bi, j, flip_r: (0, 0))

    out = pl.pallas_call(
        functools.partial(_controls_mlp_kernel, tile_batch=tb),
        out_shape=jax.ShapeDtypeStruct((b_pad, a_pad), jnp.float32),
        grid_spec=pltpu.PrefetchScalarGridSpec(
            num_scalar_prefetch=1,                   # flip -> SMEM
            grid=grid,
            in_specs=[
                pl.BlockSpec((tb, F, 1), lambda bi, j, flip_r: (bi, 0, 0)),   # pe_proj
                pl.BlockSpec((tb, 8, ta), lambda bi, j, flip_r: (bi, 0, j)),  # actions
                const(F, 8), const(F, 8),                                     # w1a, w1a_flip
                const(F, F), const(F, 1),                                     # layer 2
                const(1, F), const(1, 1),                                     # layer 3
            ],
            out_specs=pl.BlockSpec((tb, ta), lambda bi, j, flip_r: (bi, j)),
        ),
        compiler_params=pltpu.CompilerParams(
            dimension_semantics=("parallel", "parallel")),
    )(flip_i, pe_proj, act_t, w1a_t, w1a_flip_t, w2_t, b2_t, w3_t, b3_t)

    return out[:B, :A]


def init_params(key, in_features, features=32):
    """Deterministic synthetic weights (x @ W layout, matching the reference)."""
    din = in_features + 8
    keys = jax.random.split(key, 6)
    s1 = 1.0 / jnp.sqrt(din)
    s2 = 1.0 / jnp.sqrt(features)
    w1 = jax.random.uniform(keys[0], (din, features), jnp.float32, -s1, s1)
    b1 = jax.random.uniform(keys[1], (1, features), jnp.float32, -s1, s1)
    w2 = jax.random.uniform(keys[2], (features, features), jnp.float32, -s2, s2)
    b2 = jax.random.uniform(keys[3], (1, features), jnp.float32, -s2, s2)
    w3 = jax.random.uniform(keys[4], (features, 1), jnp.float32, -s2, s2)
    b3 = jax.random.uniform(keys[5], (1, 1), jnp.float32, -s2, s2)
    w1p, w1a = w1[:in_features], w1[in_features:]
    return (w1p, w1a, b1, w2, b2, w3, b3)


def reference_forward(player_emb, actions, flip, params):
    """Pure-JAX reference mirroring the PyTorch module exactly."""
    w1p, w1a, b1, w2, b2, w3, b3 = params
    B = player_emb.shape[0]
    A = actions.shape[1]
    act = jnp.where(flip[:, None, None],
                    actions * INVERT_SIDE_ACTIONS[None, None, :], actions)
    pe = jnp.broadcast_to(player_emb[:, None, :], (B, A, player_emb.shape[1]))
    x = jnp.concatenate([pe, act], axis=2)
    w1 = jnp.concatenate([w1p, w1a], axis=0)
    hp = lax.Precision.HIGHEST
    h = jnp.maximum(jnp.dot(x, w1, precision=hp) + b1, 0.0)
    h = jnp.maximum(jnp.dot(h, w2, precision=hp) + b2, 0.0)
    y = jnp.dot(h, w3, precision=hp) + b3
    return y[..., 0]


if __name__ == "__main__":
    B, A, IN_FEATURES, FEATURES = 2, 8, 24, 32

    key = jax.random.PRNGKey(0)
    k_pe, k_act, k_params = jax.random.split(key, 3)

    player_emb = jax.random.normal(k_pe, (B, IN_FEATURES), jnp.float32)
    actions = jax.random.normal(k_act, (B, A, 8), jnp.float32)
    flip = jnp.array([True, False])
    params = init_params(k_params, IN_FEATURES, FEATURES)

    ref = reference_forward(player_emb, actions, flip, params)

    # f32 path (exact vs reference).
    out = controls_predictor_linear(player_emb, actions, flip, params)
    out = jax.block_until_ready(out)
    assert out.shape == (B, A)
    assert jnp.allclose(out, ref, atol=1e-5, rtol=1e-5)

    # bf16 action-stream path (v6e/v7x HBM-traffic win); everything else f32.
    out_bf16 = controls_predictor_linear(player_emb, actions, flip, params,
                                         use_bf16=True)
    out_bf16 = jax.block_until_ready(out_bf16)
    assert jnp.allclose(out_bf16, ref, atol=5e-2, rtol=5e-2)

    print("KERNEL_OK")
</pallas_src>

<mosaic_0001>
module attributes {stable_mosaic.version = 11 : i64} {
  func.func @_controls_mlp_kernel(%arg0: i32, %arg1: i32, %arg2: memref<8xi32, #tpu.memory_space<smem>>, %arg3: memref<8x32x1xf32, #tpu.memory_space<vmem>>, %arg4: memref<8x8x128xf32, #tpu.memory_space<vmem>>, %arg5: memref<32x8xf32, #tpu.memory_space<vmem>>, %arg6: memref<32x8xf32, #tpu.memory_space<vmem>>, %arg7: memref<32x32xf32, #tpu.memory_space<vmem>>, %arg8: memref<32x1xf32, #tpu.memory_space<vmem>>, %arg9: memref<1x32xf32, #tpu.memory_space<vmem>>, %arg10: memref<1x1xf32, #tpu.memory_space<vmem>>, %arg11: memref<8x128xf32, #tpu.memory_space<vmem>>) attributes {dimension_semantics = [#tpu.dimension_semantics<parallel>, #tpu.dimension_semantics<parallel>], iteration_bounds = array<i64: 1, 1>, scalar_prefetch = 1 : i64, scratch_operands = 0 : i64, tpu.core_type = #tpu.core_type<tc>, window_params = [{transform_indices = @transform_0, window_bounds = array<i64: 8, 32, 1>}, {transform_indices = @transform_1, window_bounds = array<i64: 8, 8, 128>}, {pipeline_mode = #tpu.pipeline_mode<synchronous>, transform_indices = @transform_2, window_bounds = array<i64: 32, 8>}, {pipeline_mode = #tpu.pipeline_mode<synchronous>, transform_indices = @transform_3, window_bounds = array<i64: 32, 8>}, {pipeline_mode = #tpu.pipeline_mode<synchronous>, transform_indices = @transform_4, window_bounds = array<i64: 32, 32>}, {pipeline_mode = #tpu.pipeline_mode<synchronous>, transform_indices = @transform_5, window_bounds = array<i64: 32, 1>}, {pipeline_mode = #tpu.pipeline_mode<synchronous>, transform_indices = @transform_6, window_bounds = array<i64: 1, 32>}, {pipeline_mode = #tpu.pipeline_mode<synchronous>, transform_indices = @transform_7, window_bounds = array<i64: 1, 1>}, {transform_indices = @transform_8, window_bounds = array<i64: 8, 128>}]} {
    %c8_i32 = arith.constant 8 : i32
    %0 = arith.muli %arg0, %c8_i32 : i32
    %c0 = arith.constant 0 : index
    %c0_0 = arith.constant 0 : index
    %1 = vector.load %arg5[%c0, %c0_0] : memref<32x8xf32, #tpu.memory_space<vmem>>, vector<32x8xf32>
    %c0_1 = arith.constant 0 : index
    %c0_2 = arith.constant 0 : index
    %2 = vector.load %arg6[%c0_1, %c0_2] : memref<32x8xf32, #tpu.memory_space<vmem>>, vector<32x8xf32>
    %c0_3 = arith.constant 0 : index
    %c0_4 = arith.constant 0 : index
    %3 = vector.load %arg7[%c0_3, %c0_4] : memref<32x32xf32, #tpu.memory_space<vmem>>, vector<32x32xf32>
    %c0_5 = arith.constant 0 : index
    %c0_6 = arith.constant 0 : index
    %4 = vector.load %arg8[%c0_5, %c0_6] : memref<32x1xf32, #tpu.memory_space<vmem>>, vector<32x1xf32>
    %c0_7 = arith.constant 0 : index
    %c0_8 = arith.constant 0 : index
    %5 = vector.load %arg9[%c0_7, %c0_8] : memref<1x32xf32, #tpu.memory_space<vmem>>, vector<1x32xf32>
    %c0_9 = arith.constant 0 : index
    %c0_10 = arith.constant 0 : index
    %6 = vector.load %arg10[%c0_9, %c0_10] : memref<1x1xf32, #tpu.memory_space<vmem>>, vector<1x1xf32>
    %c0_i32 = arith.constant 0 : i32
    %7 = arith.addi %0, %c0_i32 : i32
    %8 = arith.index_cast %7 : i32 to index
    %9 = memref.load %arg2[%8] : memref<8xi32, #tpu.memory_space<smem>>
    %c0_i32_11 = arith.constant 0 : i32
    %10 = arith.cmpi ne, %9, %c0_i32_11 : i32
    %11 = arith.select %10, %2, %1 : vector<32x8xf32>
    %c0_12 = arith.constant 0 : index
    %c0_13 = arith.constant 0 : index
    %c0_14 = arith.constant 0 : index
    %12 = vector.load %arg4[%c0_12, %c0_13, %c0_14] : memref<8x8x128xf32, #tpu.memory_space<vmem>>, vector<1x8x128xf32>
    %13 = vector.shape_cast %12 : vector<1x8x128xf32> to vector<8x128xf32>
    %c0_15 = arith.constant 0 : index
    %c0_16 = arith.constant 0 : index
    %c0_17 = arith.constant 0 : index
    %14 = vector.load %arg3[%c0_15, %c0_16, %c0_17] : memref<8x32x1xf32, #tpu.memory_space<vmem>>, vector<1x32x1xf32>
    %15 = vector.shape_cast %14 : vector<1x32x1xf32> to vector<32x1xf32>
    %cst = arith.constant dense<0.000000e+00> : vector<32x128xf32>
    %16 = tpu.matmul %11, %13, %cst {dimension_numbers = #tpu.dot_dimension_numbers<[1], [0], [0], [1], [0, 0, 1, 1], [], []>} : vector<32x8xf32>, vector<8x128xf32>, vector<32x128xf32> -> vector<32x128xf32>
    %17 = vector.broadcast %15 : vector<32x1xf32> to vector<32x128xf32>
    %18 = arith.addf %16, %17 : vector<32x128xf32>
    %cst_18 = arith.constant 0.000000e+00 : f32
    %19 = vector.broadcast %cst_18 : f32 to vector<32x128xf32>
    %20 = arith.maximumf %18, %19 : vector<32x128xf32>
    %cst_19 = arith.constant dense<0.000000e+00> : vector<32x128xf32>
    %21 = tpu.matmul %3, %20, %cst_19 {dimension_numbers = #tpu.dot_dimension_numbers<[1], [0], [0], [1], [0, 0, 1, 1], [], []>} : vector<32x32xf32>, vector<32x128xf32>, vector<32x128xf32> -> vector<32x128xf32>
    %22 = vector.broadcast %4 : vector<32x1xf32> to vector<32x128xf32>
    %23 = arith.addf %21, %22 : vector<32x128xf32>
    %cst_20 = arith.constant 0.000000e+00 : f32
    %24 = vector.broadcast %cst_20 : f32 to vector<32x128xf32>
    %25 = arith.maximumf %23, %24 : vector<32x128xf32>
    %cst_21 = arith.constant dense<0.000000e+00> : vector<1x128xf32>
    %26 = tpu.matmul %5, %25, %cst_21 {dimension_numbers = #tpu.dot_dimension_numbers<[1], [0], [0], [1], [0, 0, 1, 1], [], []>} : vector<1x32xf32>, vector<32x128xf32>, vector<1x128xf32> -> vector<1x128xf32>
    %27 = vector.broadcast %6 : vector<1x1xf32> to vector<1x128xf32>
    %28 = arith.addf %26, %27 : vector<1x128xf32>
    %c1_i32 = arith.constant 1 : i32
    %29 = arith.addi %0, %c1_i32 : i32
    %30 = arith.index_cast %29 : i32 to index
    %31 = memref.load %arg2[%30] : memref<8xi32, #tpu.memory_space<smem>>
    %c0_i32_22 = arith.constant 0 : i32
    %32 = arith.cmpi ne, %31, %c0_i32_22 : i32
    %33 = arith.select %32, %2, %1 : vector<32x8xf32>
    %c1 = arith.constant 1 : index
    %c0_23 = arith.constant 0 : index
    %c0_24 = arith.constant 0 : index
    %34 = vector.load %arg4[%c1, %c0_23, %c0_24] : memref<8x8x128xf32, #tpu.memory_space<vmem>>, vector<1x8x128xf32>
    %35 = vector.shape_cast %34 : vector<1x8x128xf32> to vector<8x128xf32>
    %c1_25 = arith.constant 1 : index
    %c0_26 = arith.constant 0 : index
    %c0_27 = arith.constant 0 : index
    %36 = vector.load %arg3[%c1_25, %c0_26, %c0_27] : memref<8x32x1xf32, #tpu.memory_space<vmem>>, vector<1x32x1xf32>
    %37 = vector.shape_cast %36 : vector<1x32x1xf32> to vector<32x1xf32>
    %cst_28 = arith.constant dense<0.000000e+00> : vector<32x128xf32>
    %38 = tpu.matmul %33, %35, %cst_28 {dimension_numbers = #tpu.dot_dimension_numbers<[1], [0], [0], [1], [0, 0, 1, 1], [], []>} : vector<32x8xf32>, vector<8x128xf32>, vector<32x128xf32> -> vector<32x128xf32>
    %39 = vector.broadcast %37 : vector<32x1xf32> to vector<32x128xf32>
    %40 = arith.addf %38, %39 : vector<32x128xf32>
    %cst_29 = arith.constant 0.000000e+00 : f32
    %41 = vector.broadcast %cst_29 : f32 to vector<32x128xf32>
    %42 = arith.maximumf %40, %41 : vector<32x128xf32>
    %cst_30 = arith.constant dense<0.000000e+00> : vector<32x128xf32>
    %43 = tpu.matmul %3, %42, %cst_30 {dimension_numbers = #tpu.dot_dimension_numbers<[1], [0], [0], [1], [0, 0, 1, 1], [], []>} : vector<32x32xf32>, vector<32x128xf32>, vector<32x128xf32> -> vector<32x128xf32>
    %44 = vector.broadcast %4 : vector<32x1xf32> to vector<32x128xf32>
    %45 = arith.addf %43, %44 : vector<32x128xf32>
    %cst_31 = arith.constant 0.000000e+00 : f32
    %46 = vector.broadcast %cst_31 : f32 to vector<32x128xf32>
    %47 = arith.maximumf %45, %46 : vector<32x128xf32>
    %cst_32 = arith.constant dense<0.000000e+00> : vector<1x128xf32>
    %48 = tpu.matmul %5, %47, %cst_32 {dimension_numbers = #tpu.dot_dimension_numbers<[1], [0], [0], [1], [0, 0, 1, 1], [], []>} : vector<1x32xf32>, vector<32x128xf32>, vector<1x128xf32> -> vector<1x128xf32>
    %49 = vector.broadcast %6 : vector<1x1xf32> to vector<1x128xf32>
    %50 = arith.addf %48, %49 : vector<1x128xf32>
    %c2_i32 = arith.constant 2 : i32
    %51 = arith.addi %0, %c2_i32 : i32
    %52 = arith.index_cast %51 : i32 to index
    %53 = memref.load %arg2[%52] : memref<8xi32, #tpu.memory_space<smem>>
    %c0_i32_33 = arith.constant 0 : i32
    %54 = arith.cmpi ne, %53, %c0_i32_33 : i32
    %55 = arith.select %54, %2, %1 : vector<32x8xf32>
    %c2 = arith.constant 2 : index
    %c0_34 = arith.constant 0 : index
    %c0_35 = arith.constant 0 : index
    %56 = vector.load %arg4[%c2, %c0_34, %c0_35] : memref<8x8x128xf32, #tpu.memory_space<vmem>>, vector<1x8x128xf32>
    %57 = vector.shape_cast %56 : vector<1x8x128xf32> to vector<8x128xf32>
    %c2_36 = arith.constant 2 : index
    %c0_37 = arith.constant 0 : index
    %c0_38 = arith.constant 0 : index
    %58 = vector.load %arg3[%c2_36, %c0_37, %c0_38] : memref<8x32x1xf32, #tpu.memory_space<vmem>>, vector<1x32x1xf32>
    %59 = vector.shape_cast %58 : vector<1x32x1xf32> to vector<32x1xf32>
    %cst_39 = arith.constant dense<0.000000e+00> : vector<32x128xf32>
    %60 = tpu.matmul %55, %57, %cst_39 {dimension_numbers = #tpu.dot_dimension_numbers<[1], [0], [0], [1], [0, 0, 1, 1], [], []>} : vector<32x8xf32>, vector<8x128xf32>, vector<32x128xf32> -> vector<32x128xf32>
    %61 = vector.broadcast %59 : vector<32x1xf32> to vector<32x128xf32>
    %62 = arith.addf %60, %61 : vector<32x128xf32>
    %cst_40 = arith.constant 0.000000e+00 : f32
    %63 = vector.broadcast %cst_40 : f32 to vector<32x128xf32>
    %64 = arith.maximumf %62, %63 : vector<32x128xf32>
    %cst_41 = arith.constant dense<0.000000e+00> : vector<32x128xf32>
    %65 = tpu.matmul %3, %64, %cst_41 {dimension_numbers = #tpu.dot_dimension_numbers<[1], [0], [0], [1], [0, 0, 1, 1], [], []>} : vector<32x32xf32>, vector<32x128xf32>, vector<32x128xf32> -> vector<32x128xf32>
    %66 = vector.broadcast %4 : vector<32x1xf32> to vector<32x128xf32>
    %67 = arith.addf %65, %66 : vector<32x128xf32>
    %cst_42 = arith.constant 0.000000e+00 : f32
    %68 = vector.broadcast %cst_42 : f32 to vector<32x128xf32>
    %69 = arith.maximumf %67, %68 : vector<32x128xf32>
    %cst_43 = arith.constant dense<0.000000e+00> : vector<1x128xf32>
    %70 = tpu.matmul %5, %69, %cst_43 {dimension_numbers = #tpu.dot_dimension_numbers<[1], [0], [0], [1], [0, 0, 1, 1], [], []>} : vector<1x32xf32>, vector<32x128xf32>, vector<1x128xf32> -> vector<1x128xf32>
    %71 = vector.broadcast %6 : vector<1x1xf32> to vector<1x128xf32>
    %72 = arith.addf %70, %71 : vector<1x128xf32>
    %c3_i32 = arith.constant 3 : i32
    %73 = arith.addi %0, %c3_i32 : i32
    %74 = arith.index_cast %73 : i32 to index
    %75 = memref.load %arg2[%74] : memref<8xi32, #tpu.memory_space<smem>>
    %c0_i32_44 = arith.constant 0 : i32
    %76 = arith.cmpi ne, %75, %c0_i32_44 : i32
    %77 = arith.select %76, %2, %1 : vector<32x8xf32>
    %c3 = arith.constant 3 : index
    %c0_45 = arith.constant 0 : index
    %c0_46 = arith.constant 0 : index
    %78 = vector.load %arg4[%c3, %c0_45, %c0_46] : memref<8x8x128xf32, #tpu.memory_space<vmem>>, vector<1x8x128xf32>
    %79 = vector.shape_cast %78 : vector<1x8x128xf32> to vector<8x128xf32>
    %c3_47 = arith.constant 3 : index
    %c0_48 = arith.constant 0 : index
    %c0_49 = arith.constant 0 : index
    %80 = vector.load %arg3[%c3_47, %c0_48, %c0_49] : memref<8x32x1xf32, #tpu.memory_space<vmem>>, vector<1x32x1xf32>
    %81 = vector.shape_cast %80 : vector<1x32x1xf32> to vector<32x1xf32>
    %cst_50 = arith.constant dense<0.000000e+00> : vector<32x128xf32>
    %82 = tpu.matmul %77, %79, %cst_50 {dimension_numbers = #tpu.dot_dimension_numbers<[1], [0], [0], [1], [0, 0, 1, 1], [], []>} : vector<32x8xf32>, vector<8x128xf32>, vector<32x128xf32> -> vector<32x128xf32>
    %83 = vector.broadcast %81 : vector<32x1xf32> to vector<32x128xf32>
    %84 = arith.addf %82, %83 : vector<32x128xf32>
    %cst_51 = arith.constant 0.000000e+00 : f32
    %85 = vector.broadcast %cst_51 : f32 to vector<32x128xf32>
    %86 = arith.maximumf %84, %85 : vector<32x128xf32>
    %cst_52 = arith.constant dense<0.000000e+00> : vector<32x128xf32>
    %87 = tpu.matmul %3, %86, %cst_52 {dimension_numbers = #tpu.dot_dimension_numbers<[1], [0], [0], [1], [0, 0, 1, 1], [], []>} : vector<32x32xf32>, vector<32x128xf32>, vector<32x128xf32> -> vector<32x128xf32>
    %88 = vector.broadcast %4 : vector<32x1xf32> to vector<32x128xf32>
    %89 = arith.addf %87, %88 : vector<32x128xf32>
    %cst_53 = arith.constant 0.000000e+00 : f32
    %90 = vector.broadcast %cst_53 : f32 to vector<32x128xf32>
    %91 = arith.maximumf %89, %90 : vector<32x128xf32>
    %cst_54 = arith.constant dense<0.000000e+00> : vector<1x128xf32>
    %92 = tpu.matmul %5, %91, %cst_54 {dimension_numbers = #tpu.dot_dimension_numbers<[1], [0], [0], [1], [0, 0, 1, 1], [], []>} : vector<1x32xf32>, vector<32x128xf32>, vector<1x128xf32> -> vector<1x128xf32>
    %93 = vector.broadcast %6 : vector<1x1xf32> to vector<1x128xf32>
    %94 = arith.addf %92, %93 : vector<1x128xf32>
    %c4_i32 = arith.constant 4 : i32
    %95 = arith.addi %0, %c4_i32 : i32
    %96 = arith.index_cast %95 : i32 to index
    %97 = memref.load %arg2[%96] : memref<8xi32, #tpu.memory_space<smem>>
    %c0_i32_55 = arith.constant 0 : i32
    %98 = arith.cmpi ne, %97, %c0_i32_55 : i32
    %99 = arith.select %98, %2, %1 : vector<32x8xf32>
    %c4 = arith.constant 4 : index
    %c0_56 = arith.constant 0 : index
    %c0_57 = arith.constant 0 : index
    %100 = vector.load %arg4[%c4, %c0_56, %c0_57] : memref<8x8x128xf32, #tpu.memory_space<vmem>>, vector<1x8x128xf32>
    %101 = vector.shape_cast %100 : vector<1x8x128xf32> to vector<8x128xf32>
    %c4_58 = arith.constant 4 : index
    %c0_59 = arith.constant 0 : index
    %c0_60 = arith.constant 0 : index
    %102 = vector.load %arg3[%c4_58, %c0_59, %c0_60] : memref<8x32x1xf32, #tpu.memory_space<vmem>>, vector<1x32x1xf32>
    %103 = vector.shape_cast %102 : vector<1x32x1xf32> to vector<32x1xf32>
    %cst_61 = arith.constant dense<0.000000e+00> : vector<32x128xf32>
    %104 = tpu.matmul %99, %101, %cst_61 {dimension_numbers = #tpu.dot_dimension_numbers<[1], [0], [0], [1], [0, 0, 1, 1], [], []>} : vector<32x8xf32>, vector<8x128xf32>, vector<32x128xf32> -> vector<32x128xf32>
    %105 = vector.broadcast %103 : vector<32x1xf32> to vector<32x128xf32>
    %106 = arith.addf %104, %105 : vector<32x128xf32>
    %cst_62 = arith.constant 0.000000e+00 : f32
    %107 = vector.broadcast %cst_62 : f32 to vector<32x128xf32>
    %108 = arith.maximumf %106, %107 : vector<32x128xf32>
    %cst_63 = arith.constant dense<0.000000e+00> : vector<32x128xf32>
    %109 = tpu.matmul %3, %108, %cst_63 {dimension_numbers = #tpu.dot_dimension_numbers<[1], [0], [0], [1], [0, 0, 1, 1], [], []>} : vector<32x32xf32>, vector<32x128xf32>, vector<32x128xf32> -> vector<32x128xf32>
    %110 = vector.broadcast %4 : vector<32x1xf32> to vector<32x128xf32>
    %111 = arith.addf %109, %110 : vector<32x128xf32>
    %cst_64 = arith.constant 0.000000e+00 : f32
    %112 = vector.broadcast %cst_64 : f32 to vector<32x128xf32>
    %113 = arith.maximumf %111, %112 : vector<32x128xf32>
    %cst_65 = arith.constant dense<0.000000e+00> : vector<1x128xf32>
    %114 = tpu.matmul %5, %113, %cst_65 {dimension_numbers = #tpu.dot_dimension_numbers<[1], [0], [0], [1], [0, 0, 1, 1], [], []>} : vector<1x32xf32>, vector<32x128xf32>, vector<1x128xf32> -> vector<1x128xf32>
    %115 = vector.broadcast %6 : vector<1x1xf32> to vector<1x128xf32>
    %116 = arith.addf %114, %115 : vector<1x128xf32>
    %c5_i32 = arith.constant 5 : i32
    %117 = arith.addi %0, %c5_i32 : i32
    %118 = arith.index_cast %117 : i32 to index
    %119 = memref.load %arg2[%118] : memref<8xi32, #tpu.memory_space<smem>>
    %c0_i32_66 = arith.constant 0 : i32
    %120 = arith.cmpi ne, %119, %c0_i32_66 : i32
    %121 = arith.select %120, %2, %1 : vector<32x8xf32>
    %c5 = arith.constant 5 : index
    %c0_67 = arith.constant 0 : index
    %c0_68 = arith.constant 0 : index
    %122 = vector.load %arg4[%c5, %c0_67, %c0_68] : memref<8x8x128xf32, #tpu.memory_space<vmem>>, vector<1x8x128xf32>
    %123 = vector.shape_cast %122 : vector<1x8x128xf32> to vector<8x128xf32>
    %c5_69 = arith.constant 5 : index
    %c0_70 = arith.constant 0 : index
    %c0_71 = arith.constant 0 : index
    %124 = vector.load %arg3[%c5_69, %c0_70, %c0_71] : memref<8x32x1xf32, #tpu.memory_space<vmem>>, vector<1x32x1xf32>
    %125 = vector.shape_cast %124 : vector<1x32x1xf32> to vector<32x1xf32>
    %cst_72 = arith.constant dense<0.000000e+00> : vector<32x128xf32>
    %126 = tpu.matmul %121, %123, %cst_72 {dimension_numbers = #tpu.dot_dimension_numbers<[1], [0], [0], [1], [0, 0, 1, 1], [], []>} : vector<32x8xf32>, vector<8x128xf32>, vector<32x128xf32> -> vector<32x128xf32>
    %127 = vector.broadcast %125 : vector<32x1xf32> to vector<32x128xf32>
    %128 = arith.addf %126, %127 : vector<32x128xf32>
    %cst_73 = arith.constant 0.000000e+00 : f32
    %129 = vector.broadcast %cst_73 : f32 to vector<32x128xf32>
    %130 = arith.maximumf %128, %129 : vector<32x128xf32>
    %cst_74 = arith.constant dense<0.000000e+00> : vector<32x128xf32>
    %131 = tpu.matmul %3, %130, %cst_74 {dimension_numbers = #tpu.dot_dimension_numbers<[1], [0], [0], [1], [0, 0, 1, 1], [], []>} : vector<32x32xf32>, vector<32x128xf32>, vector<32x128xf32> -> vector<32x128xf32>
    %132 = vector.broadcast %4 : vector<32x1xf32> to vector<32x128xf32>
    %133 = arith.addf %131, %132 : vector<32x128xf32>
    %cst_75 = arith.constant 0.000000e+00 : f32
    %134 = vector.broadcast %cst_75 : f32 to vector<32x128xf32>
    %135 = arith.maximumf %133, %134 : vector<32x128xf32>
    %cst_76 = arith.constant dense<0.000000e+00> : vector<1x128xf32>
    %136 = tpu.matmul %5, %135, %cst_76 {dimension_numbers = #tpu.dot_dimension_numbers<[1], [0], [0], [1], [0, 0, 1, 1], [], []>} : vector<1x32xf32>, vector<32x128xf32>, vector<1x128xf32> -> vector<1x128xf32>
    %137 = vector.broadcast %6 : vector<1x1xf32> to vector<1x128xf32>
    %138 = arith.addf %136, %137 : vector<1x128xf32>
    %c6_i32 = arith.constant 6 : i32
    %139 = arith.addi %0, %c6_i32 : i32
    %140 = arith.index_cast %139 : i32 to index
    %141 = memref.load %arg2[%140] : memref<8xi32, #tpu.memory_space<smem>>
    %c0_i32_77 = arith.constant 0 : i32
    %142 = arith.cmpi ne, %141, %c0_i32_77 : i32
    %143 = arith.select %142, %2, %1 : vector<32x8xf32>
    %c6 = arith.constant 6 : index
    %c0_78 = arith.constant 0 : index
    %c0_79 = arith.constant 0 : index
    %144 = vector.load %arg4[%c6, %c0_78, %c0_79] : memref<8x8x128xf32, #tpu.memory_space<vmem>>, vector<1x8x128xf32>
    %145 = vector.shape_cast %144 : vector<1x8x128xf32> to vector<8x128xf32>
    %c6_80 = arith.constant 6 : index
    %c0_81 = arith.constant 0 : index
    %c0_82 = arith.constant 0 : index
    %146 = vector.load %arg3[%c6_80, %c0_81, %c0_82] : memref<8x32x1xf32, #tpu.memory_space<vmem>>, vector<1x32x1xf32>
    %147 = vector.shape_cast %146 : vector<1x32x1xf32> to vector<32x1xf32>
    %cst_83 = arith.constant dense<0.000000e+00> : vector<32x128xf32>
    %148 = tpu.matmul %143, %145, %cst_83 {dimension_numbers = #tpu.dot_dimension_numbers<[1], [0], [0], [1], [0, 0, 1, 1], [], []>} : vector<32x8xf32>, vector<8x128xf32>, vector<32x128xf32> -> vector<32x128xf32>
    %149 = vector.broadcast %147 : vector<32x1xf32> to vector<32x128xf32>
    %150 = arith.addf %148, %149 : vector<32x128xf32>
    %cst_84 = arith.constant 0.000000e+00 : f32
    %151 = vector.broadcast %cst_84 : f32 to vector<32x128xf32>
    %152 = arith.maximumf %150, %151 : vector<32x128xf32>
    %cst_85 = arith.constant dense<0.000000e+00> : vector<32x128xf32>
    %153 = tpu.matmul %3, %152, %cst_85 {dimension_numbers = #tpu.dot_dimension_numbers<[1], [0], [0], [1], [0, 0, 1, 1], [], []>} : vector<32x32xf32>, vector<32x128xf32>, vector<32x128xf32> -> vector<32x128xf32>
    %154 = vector.broadcast %4 : vector<32x1xf32> to vector<32x128xf32>
    %155 = arith.addf %153, %154 : vector<32x128xf32>
    %cst_86 = arith.constant 0.000000e+00 : f32
    %156 = vector.broadcast %cst_86 : f32 to vector<32x128xf32>
    %157 = arith.maximumf %155, %156 : vector<32x128xf32>
    %cst_87 = arith.constant dense<0.000000e+00> : vector<1x128xf32>
    %158 = tpu.matmul %5, %157, %cst_87 {dimension_numbers = #tpu.dot_dimension_numbers<[1], [0], [0], [1], [0, 0, 1, 1], [], []>} : vector<1x32xf32>, vector<32x128xf32>, vector<1x128xf32> -> vector<1x128xf32>
    %159 = vector.broadcast %6 : vector<1x1xf32> to vector<1x128xf32>
    %160 = arith.addf %158, %159 : vector<1x128xf32>
    %c7_i32 = arith.constant 7 : i32
    %161 = arith.addi %0, %c7_i32 : i32
    %162 = arith.index_cast %161 : i32 to index
    %163 = memref.load %arg2[%162] : memref<8xi32, #tpu.memory_space<smem>>
    %c0_i32_88 = arith.constant 0 : i32
    %164 = arith.cmpi ne, %163, %c0_i32_88 : i32
    %165 = arith.select %164, %2, %1 : vector<32x8xf32>
    %c7 = arith.constant 7 : index
    %c0_89 = arith.constant 0 : index
    %c0_90 = arith.constant 0 : index
    %166 = vector.load %arg4[%c7, %c0_89, %c0_90] : memref<8x8x128xf32, #tpu.memory_space<vmem>>, vector<1x8x128xf32>
    %167 = vector.shape_cast %166 : vector<1x8x128xf32> to vector<8x128xf32>
    %c7_91 = arith.constant 7 : index
    %c0_92 = arith.constant 0 : index
    %c0_93 = arith.constant 0 : index
    %168 = vector.load %arg3[%c7_91, %c0_92, %c0_93] : memref<8x32x1xf32, #tpu.memory_space<vmem>>, vector<1x32x1xf32>
    %169 = vector.shape_cast %168 : vector<1x32x1xf32> to vector<32x1xf32>
    %cst_94 = arith.constant dense<0.000000e+00> : vector<32x128xf32>
    %170 = tpu.matmul %165, %167, %cst_94 {dimension_numbers = #tpu.dot_dimension_numbers<[1], [0], [0], [1], [0, 0, 1, 1], [], []>} : vector<32x8xf32>, vector<8x128xf32>, vector<32x128xf32> -> vector<32x128xf32>
    %171 = vector.broadcast %169 : vector<32x1xf32> to vector<32x128xf32>
    %172 = arith.addf %170, %171 : vector<32x128xf32>
    %cst_95 = arith.constant 0.000000e+00 : f32
    %173 = vector.broadcast %cst_95 : f32 to vector<32x128xf32>
    %174 = arith.maximumf %172, %173 : vector<32x128xf32>
    %cst_96 = arith.constant dense<0.000000e+00> : vector<32x128xf32>
    %175 = tpu.matmul %3, %174, %cst_96 {dimension_numbers = #tpu.dot_dimension_numbers<[1], [0], [0], [1], [0, 0, 1, 1], [], []>} : vector<32x32xf32>, vector<32x128xf32>, vector<32x128xf32> -> vector<32x128xf32>
    %176 = vector.broadcast %4 : vector<32x1xf32> to vector<32x128xf32>
    %177 = arith.addf %175, %176 : vector<32x128xf32>
    %cst_97 = arith.constant 0.000000e+00 : f32
    %178 = vector.broadcast %cst_97 : f32 to vector<32x128xf32>
    %179 = arith.maximumf %177, %178 : vector<32x128xf32>
    %cst_98 = arith.constant dense<0.000000e+00> : vector<1x128xf32>
    %180 = tpu.matmul %5, %179, %cst_98 {dimension_numbers = #tpu.dot_dimension_numbers<[1], [0], [0], [1], [0, 0, 1, 1], [], []>} : vector<1x32xf32>, vector<32x128xf32>, vector<1x128xf32> -> vector<1x128xf32>
    %181 = vector.broadcast %6 : vector<1x1xf32> to vector<1x128xf32>
    %182 = arith.addf %180, %181 : vector<1x128xf32>
    %183 = tpu.concatenate %28, %50, %72, %94, %116, %138, %160, %182 in 0 : vector<1x128xf32>, vector<1x128xf32>, vector<1x128xf32>, vector<1x128xf32>, vector<1x128xf32>, vector<1x128xf32>, vector<1x128xf32>, vector<1x128xf32> -> vector<8x128xf32>
    %c0_99 = arith.constant 0 : index
    %c0_100 = arith.constant 0 : index
    %184 = vector.load %arg11[%c0_99, %c0_100] : memref<8x128xf32, #tpu.memory_space<vmem>>, vector<8x128xf32>
    tpu.vector_store %arg11[%c0_99, %c0_100], %183 {strides = array<i32>} : memref<8x128xf32, #tpu.memory_space<vmem>>, vector<8x128xf32>,
    return
  }
  func.func @transform_0(%arg0: i32, %arg1: i32, %arg2: memref<8xi32, #tpu.memory_space<smem>>) -> (i32, i32, i32) {
    %c0_i32 = arith.constant 0 : i32
    %c0_i32_0 = arith.constant 0 : i32
    %c0_i32_1 = arith.constant 0 : i32
    return %arg0, %c0_i32, %c0_i32_0 : i32, i32, i32
  }
  func.func @transform_1(%arg0: i32, %arg1: i32, %arg2: memref<8xi32, #tpu.memory_space<smem>>) -> (i32, i32, i32) {
    %c0_i32 = arith.constant 0 : i32
    %c0_i32_0 = arith.constant 0 : i32
    return %arg0, %c0_i32, %arg1 : i32, i32, i32
  }
  func.func @transform_2(%arg0: i32, %arg1: i32, %arg2: memref<8xi32, #tpu.memory_space<smem>>) -> (i32, i32) {
    %c0_i32 = arith.constant 0 : i32
    %c0_i32_0 = arith.constant 0 : i32
    %c0_i32_1 = arith.constant 0 : i32
    return %c0_i32, %c0_i32_0 : i32, i32
  }
  func.func @transform_3(%arg0: i32, %arg1: i32, %arg2: memref<8xi32, #tpu.memory_space<smem>>) -> (i32, i32) {
    %c0_i32 = arith.constant 0 : i32
    %c0_i32_0 = arith.constant 0 : i32
    %c0_i32_1 = arith.constant 0 : i32
    return %c0_i32, %c0_i32_0 : i32, i32
  }
  func.func @transform_4(%arg0: i32, %arg1: i32, %arg2: memref<8xi32, #tpu.memory_space<smem>>) -> (i32, i32) {
    %c0_i32 = arith.constant 0 : i32
    %c0_i32_0 = arith.constant 0 : i32
    %c0_i32_1 = arith.constant 0 : i32
    return %c0_i32, %c0_i32_0 : i32, i32
  }
  func.func @transform_5(%arg0: i32, %arg1: i32, %arg2: memref<8xi32, #tpu.memory_space<smem>>) -> (i32, i32) {
    %c0_i32 = arith.constant 0 : i32
    %c0_i32_0 = arith.constant 0 : i32
    %c0_i32_1 = arith.constant 0 : i32
    return %c0_i32, %c0_i32_0 : i32, i32
  }
  func.func @transform_6(%arg0: i32, %arg1: i32, %arg2: memref<8xi32, #tpu.memory_space<smem>>) -> (i32, i32) {
    %c0_i32 = arith.constant 0 : i32
    %c0_i32_0 = arith.constant 0 : i32
    %c0_i32_1 = arith.constant 0 : i32
    return %c0_i32, %c0_i32_0 : i32, i32
  }
  func.func @transform_7(%arg0: i32, %arg1: i32, %arg2: memref<8xi32, #tpu.memory_space<smem>>) -> (i32, i32) {
    %c0_i32 = arith.constant 0 : i32
    %c0_i32_0 = arith.constant 0 : i32
    %c0_i32_1 = arith.constant 0 : i32
    return %c0_i32, %c0_i32_0 : i32, i32
  }
  func.func @transform_8(%arg0: i32, %arg1: i32, %arg2: memref<8xi32, #tpu.memory_space<smem>>) -> (i32, i32) {
    %c0_i32 = arith.constant 0 : i32
    return %arg0, %arg1 : i32, i32
  }
}

</mosaic_0001>

<bundles_post_ra>
// kernel: tpu_custom_call.1
= control target key start
LH: loop header
LB: loop body
LE: loop exit
PB: predicated region body
PF: predicated region fallthrough
CT: control target
= control target key end

     0   :  { %s3823_s0 = inlined_call_operand.vmem [shape: s32[8], index: 0, kind: input, shape index: {}]   ;;  %s3824_s1 = inlined_call_operand.vmem [shape: f32[8,32,1], index: 1, kind: input, shape index: {}]   ;;  %s3825_s2 = inlined_call_operand.vmem [shape: f32[8,8,128], index: 2, kind: input, shape index: {}]   ;;  %s3826_s3 = inlined_call_operand.vmem [shape: f32[32,8], index: 3, kind: input, shape index: {}]   ;;  %s3827_s4 = inlined_call_operand.vmem [shape: f32[32,8], index: 4, kind: input, shape index: {}]   ;;  %s3828_s5 = inlined_call_operand.vmem [shape: f32[32,32], index: 5, kind: input, shape index: {}]   ;;  %s3829_s6 = inlined_call_operand.vmem [shape: f32[32,1], index: 6, kind: input, shape index: {}]   ;;  %s3830_s7 = inlined_call_operand.vmem [shape: f32[1,32], index: 7, kind: input, shape index: {}]   ;;  %s3831_s9 = inlined_call_operand.hbm [shape: f32[8,128], index: 9, kind: output, shape index: {}]   ;;  %s3832_s8 = inlined_call_operand.<no memory space> [shape: f32[1,1], index: 8, kind: input, shape index: {}]  }
   0x1   :  { %s14_s11 = sshll.u32 %s3823_s0, 4  ;;  %v18_v0 = vstv %s3832_s8  ;;  %s15_s11 = int_to_ptr.vmem [resolvable:$true] %s14_s11 }
   0x2   :  { %19 = vst [vmem:[#allocation4] sm:$0x1] %v18_v0  ;;  %s3177_s14 = scalar_lea.vmem %s15_s11, 16  ;;  %p3182_p1 = scmp.lt.s32.totalorder %s15_s11, %s15_s11 }
   0x3   :  { %p3178_p0 = scmp.ne.s32.totalorder %s15_s11, %s3177_s14  ;;  %p3183_p2 = scmp.lt.s32.totalorder %s3177_s14, %s3177_s14 }
   0x5   :  { %p3184_p3 = por %p3183_p2, %p3182_p1 }
   0x7   :  { %p3185_p4 = pnand %p3184_p3, %p3178_p0 }
   0x9   :  { %3188 = shalt.err (!%p3185_p4)  }
   0xa   :  { %s3215_s15 = smov [#allocation3]  }
   0xb   :  { %17 = dma.vmem_to_smem %s15_s11, 16, %s3215_s15, [#allocation2] }
   0xc   :  { %3211 = dma.done.wait [#allocation2], 16 }
   0xd   :  { %3212 = vsyncadd [#allocation2], 4294967280 }
   0xe   :  { %21 = sfence }
   0xf   :  { %v67_v1 = vld [vmem:[%s3825_s2] sm:$0xff]  ;;  %s58_s17 = sld [smem:[#allocation3]]  ;;  %v3216_v2 = vmov 0   ;;  %v70_v4 = vld [vmem:[%s3824_s1 + $0x10] sm:$0xff]  ;;  %v69_v5 = vld [vmem:[%s3824_s1 + $0x8] sm:$0xff]  ;;  %vm92_vm0 = vcmask 64512  }
  0x10   :  { %2785 = vmatprep.subr.mxu0 %v67_v1  ;;  %3167 = vset.pattern.permute.xlu0 %v3216_v2  ;;  %v68_v3 = vld [vmem:[%s3824_s1] sm:$0xff]  ;;  %v71_v6 = vld [vmem:[%s3824_s1 + $0x18] sm:$0xff]  ;;  %v3305_v9 = vld [vmem:[%s3826_s3 + $0x8] sm:$0xff] }
  0x11   :  { %2786 = vmatpush3.msra.mxu0 %v67_v1  ;;  %3168 = vset.pattern.permute.xlu1 %v3216_v2  ;;  %v3295_v7 = vld [vmem:[%s3826_s3] sm:$0xff]  ;;  %v3310_v10 = vld [vmem:[%s3827_s4 + $0x8] sm:$0xff]  ;;  %v3315_v11 = vld [vmem:[%s3826_s3 + $0x10] sm:$0xff] }
  0x12   :  { %74 = vperm.xlu0 %3167, %v68_v3   ;;  %84 = vperm.xlu1 %3168, %v70_v4   ;;  %v3300_v8 = vld [vmem:[%s3827_s4] sm:$0xff]  ;;  %v3320_v12 = vld [vmem:[%s3827_s4 + $0x10] sm:$0xff]  ;;  %v53_v15 = vld [vmem:[%s3829_s6 + $0x8] sm:$0xff] }
  0x13   :  { %v52_v13 = vld [vmem:[%s3829_s6] sm:$0xff]  ;;  %v3347_v20 = vld [vmem:[%s3826_s3 + $0x18] sm:$0xff]  ;;  %v54_v22 = vld [vmem:[%s3829_s6 + $0x10] sm:$0xff] }
  0x14   :  { %v3352_v21 = vld [vmem:[%s3827_s4 + $0x18] sm:$0xff] }
  0x15   :  { %p59_p5 = scmp.ne.s32.totalorder %s58_s17, 0  ;;  %v55_v23 = vld [vmem:[%s3829_s6 + $0x18] sm:$0xff] }
  0x16   :  { %79 = vperm.xlu0 %3167, %v69_v5   ;;  %89 = vperm.xlu1 %3168, %v71_v6  }
  0x17   :  { %s60_s29 = scalar_select %p59_p5, 1, 0 }
  0x19   :  { %v61_v14 = vstv %s60_s29 }
  0x1a   :  { %vm3328_vm1 = vcmp.eq.s32.totalorder %v61_v14, 1  ;;  %196 = vperm.xlu0 %3167, %v52_v13   ;;  %201 = vperm.xlu1 %3168, %v53_v15  }
  0x1b   :  { %v63_v17 = vsel %vm3328_vm1, %v3300_v8, %v3295_v7  ;;  %v64_v18 = vsel %vm3328_vm1, %v3310_v10, %v3305_v9  ;;  %v65_v19 = vsel %vm3328_vm1, %v3320_v12, %v3315_v11  ;;  %v66_v24 = vsel %vm3328_vm1, %v3352_v21, %v3347_v20 }
  0x1c   :  { %2787 = vmatprep.mubr.msk.f32.mxu0 %vm92_vm0, %v63_v17 }
  0x1d   :  { %2788 = vmatmul.mubr.msk.f32.vlgmr.msra.gmra.mrb[0].mxu0 %vm92_vm0, %v64_v18 }
  0x1e   :  { %2790 = vmatprep.mubr.msk.f32.mxu0 %vm92_vm0, %v65_v19 }
  0x1f   :  { %22 = vsyncpa [#allocation6], 0  ;;  %206 = vperm.xlu0 %3167, %v54_v22   ;;  %v2538_v25 = vld [vmem:[%s3824_s1 + $0x20] sm:$0xff]  ;;  %211 = vperm.xlu1 %3168, %v55_v23   ;;  %v2539_v26 = vld [vmem:[%s3824_s1 + $0x28] sm:$0xff]  ;;  %vm214_vm2 = vcmask 261120   ;;  %v3217_v18 = vmov 0.0|0.0  }
  0x20   :  { %v2540_v27 = vld [vmem:[%s3824_s1 + $0x30] sm:$0xff]  ;;  %v2541_v28 = vld [vmem:[%s3824_s1 + $0x38] sm:$0xff]  ;;  %v2553_v29 = vld [vmem:[%s3824_s1 + $0x40] sm:$0xff]  ;;  %3057 = vmatprep.subr.bf16.mxu0 %v3217_v18  ;;  %vm3218_vm3 = vmmov 0   ;;  %v3219_v19 = vmov 0.0   ;;  %s2536_s18 = sld [smem:[#allocation3 + $0x1]] }
  0x21   :  { %2791 = vmatmul.mubr.msk.f32.gmra.mrb[2].mxu0 %vm92_vm0, %v66_v24  ;;  %v2554_v30 = vld [vmem:[%s3824_s1 + $0x48] sm:$0xff]  ;;  %v2555_v31 = vld [vmem:[%s3824_s1 + $0x50] sm:$0xff]  ;;  %v2556_v32 = vld [vmem:[%s3824_s1 + $0x58] sm:$0xff]  ;;  %s2566_s26 = sld [smem:[#allocation3 + $0x3]]  ;;  %vm2498_vm6 = vcmask 1040384   ;;  %s2581_s30 = sld [smem:[#allocation3 + $0x4]] }
  0x22   :  { %v2568_v33 = vld [vmem:[%s3824_s1 + $0x60] sm:$0xff]  ;;  %v2569_v34 = vld [vmem:[%s3824_s1 + $0x68] sm:$0xff]  ;;  %v2570_v35 = vld [vmem:[%s3824_s1 + $0x70] sm:$0xff]  ;;  %2815 = vmatprep.mubr.msk.f32.mxu0 %vm3218_vm3, %v3219_v19  ;;  %vm2500_vm8 = vcmask 1041408   ;;  %s2596_s12 = sld [smem:[#allocation3 + $0x5]]  ;;  %vm2502_vm10 = vcmask 1042432  }
  0x23   :  { %417 = vperm.xlu0 %3167, %v2538_v25   ;;  %422 = vperm.xlu1 %3168, %v2539_v26   ;;  %v2571_v36 = vld [vmem:[%s3824_s1 + $0x78] sm:$0xff]  ;;  %v2583_v37 = vld [vmem:[%s3824_s1 + $0x80] sm:$0xff]  ;;  %v2584_v38 = vld [vmem:[%s3824_s1 + $0x88] sm:$0xff]  ;;  %s2611_s15 = sld [smem:[#allocation3 + $0x6]]  ;;  %vm2504_vm12 = vcmask 1043456   ;;  %s2626_s8 = sld [smem:[#allocation3 + $0x7]] }
  0x24   :  { %v2585_v39 = vld [vmem:[%s3824_s1 + $0x90] sm:$0xff]  ;;  %v2586_v40 = vld [vmem:[%s3824_s1 + $0x98] sm:$0xff]  ;;  %v2598_v41 = vld [vmem:[%s3824_s1 + $0xa0] sm:$0xff]  ;;  %vm2506_vm14 = vcmask 1044480   ;;  %vm2508_vm1 = vcmask 1045504  }
  0x25   :  { %v2599_v42 = vld [vmem:[%s3824_s1 + $0xa8] sm:$0xff]  ;;  %v2600_v43 = vld [vmem:[%s3824_s1 + $0xb0] sm:$0xff]  ;;  %v2601_v44 = vld [vmem:[%s3824_s1 + $0xb8] sm:$0xff] }
  0x26   :  { %v2613_v45 = vld [vmem:[%s3824_s1 + $0xc0] sm:$0xff]  ;;  %v2614_v46 = vld [vmem:[%s3824_s1 + $0xc8] sm:$0xff]  ;;  %v2615_v47 = vld [vmem:[%s3824_s1 + $0xd0] sm:$0xff]  ;;  %p400_p6 = scmp.ne.s32.totalorder %s2536_s18, 0 }
  0x27   :  { %427 = vperm.xlu0 %3167, %v2540_v27   ;;  %432 = vperm.xlu1 %3168, %v2541_v28   ;;  %v2616_v48 = vld [vmem:[%s3824_s1 + $0xd8] sm:$0xff]  ;;  %v2628_v49 = vld [vmem:[%s3824_s1 + $0xe0] sm:$0xff]  ;;  %v2629_v50 = vld [vmem:[%s3824_s1 + $0xe8] sm:$0xff]  ;;  %p994_p8 = scmp.ne.s32.totalorder %s2566_s26, 0  ;;  %p1291_p9 = scmp.ne.s32.totalorder %s2581_s30, 0 }
  0x28   :  { %v2630_v51 = vld [vmem:[%s3824_s1 + $0xf0] sm:$0xff]  ;;  %v2631_v52 = vld [vmem:[%s3824_s1 + $0xf8] sm:$0xff]  ;;  %v57_v53 = vld [vmem:[#allocation4] sm:$0x1]  ;;  %p1588_p10 = scmp.ne.s32.totalorder %s2596_s12, 0 }
  0x29   :  { %v3455_v54 = vld [vmem:[%s3828_s5] sm:$0xff]  ;;  %v3462_v15 = vld [vmem:[%s3828_s5 + $0x8] sm:$0xff]  ;;  %v3467_v16 = vld [vmem:[%s3828_s5 + $0x10] sm:$0xff]  ;;  %s995_s27 = scalar_select %p994_p8, 1, 0 }
  0x2a   :  { %2801 = vmatprep.mubr.msk.f32.mxu1 %vm214_vm2, %v3455_v54  ;;  %v3476_v17 = vld [vmem:[%s3828_s5 + $0x18] sm:$0xff]  ;;  %s401_s5 = scalar_select %p400_p6, 1, 0 }
  0x2b   :  { %714 = vperm.xlu0 %3167, %v2553_v29   ;;  %719 = vperm.xlu1 %3168, %v2554_v30   ;;  %s1292_s6 = scalar_select %p1291_p9, 1, 0 }
  0x2c   :  { %s1589_s13 = scalar_select %p1588_p10, 1, 0 }
  0x2d   :  { %p1885_p11 = scmp.ne.s32.totalorder %s2611_s15, 0  ;;  %p2182_p12 = scmp.ne.s32.totalorder %s2626_s8, 0 }
  0x2f   :  { %724 = vperm.xlu0 %3167, %v2555_v31   ;;  %729 = vperm.xlu1 %3168, %v2556_v32   ;;  %s1886_s16 = scalar_select %p1885_p11, 1, 0 }
  0x30   :  { %s2183_s18 = scalar_select %p2182_p12, 1, 0 }
  0x33   :  { %1011 = vperm.xlu0 %3167, %v2568_v33   ;;  %1016 = vperm.xlu1 %3168, %v2569_v34  }
  0x37   :  { %1021 = vperm.xlu0 %3167, %v2570_v35   ;;  %1026 = vperm.xlu1 %3168, %v2571_v36  }
  0x3b   :  { %1308 = vperm.xlu0 %3167, %v2583_v37   ;;  %1313 = vperm.xlu1 %3168, %v2584_v38   ;;  %v402_v38 = vstv %s401_s5 }
  0x3c   :  { %vm403_vm4 = vcmp.eq.s32.totalorder %v402_v38, 1 }
  0x3f   :  { %1318 = vperm.xlu0 %3167, %v2585_v39   ;;  %1323 = vperm.xlu1 %3168, %v2586_v40  }
  0x43   :  { %1605 = vperm.xlu0 %3167, %v2598_v41   ;;  %1610 = vperm.xlu1 %3168, %v2599_v42   ;;  %v2537_v41 = vld [vmem:[%s3825_s2 + $0x8] sm:$0xff]  ;;  %v3504_v42 = vld [vmem:[%s3830_s7] sm:$0x1]  ;;  %s2551_s7 = sld [smem:[#allocation3 + $0x2]] }
  0x47   :  { %1615 = vperm.xlu0 %3167, %v2600_v43   ;;  %1620 = vperm.xlu1 %3168, %v2601_v44   ;;  %v404_v43 = vsel %vm403_vm4, %v3300_v8, %v3295_v7  ;;  %v405_v44 = vsel %vm403_vm4, %v3310_v10, %v3305_v9 }
  0x49   :  { %p697_p7 = scmp.ne.s32.totalorder %s2551_s7, 0 }
  0x4b   :  { %1902 = vperm.xlu0 %3167, %v2613_v45   ;;  %1907 = vperm.xlu1 %3168, %v2614_v46   ;;  %v406_v45 = vsel %vm403_vm4, %v3320_v12, %v3315_v11  ;;  %v407_v46 = vsel %vm403_vm4, %v3352_v21, %v3347_v20  ;;  %s698_s23 = scalar_select %p697_p7, 1, 0 }
  0x4f   :  { %1912 = vperm.xlu0 %3167, %v2615_v47   ;;  %1917 = vperm.xlu1 %3168, %v2616_v48  }
  0x53   :  { %2199 = vperm.xlu0 %3167, %v2628_v49   ;;  %2204 = vperm.xlu1 %3168, %v2629_v50  }
  0x57   :  { %2209 = vperm.xlu0 %3167, %v2630_v51   ;;  %2214 = vperm.xlu1 %3168, %v2631_v52  }
  0x5b   :  { %318 = vperm.xlu0 %3167, %v57_v53  }
  0x91   :  { %v75_v55 = vpop.permute.xlu0 %74  ;;  %v85_v56 = vpop.permute.xlu1 %84 }
  0x95   :  { %v80_v57 = vpop.permute.xlu0 %79  ;;  %v90_v63 = vpop.permute.xlu1 %89 }
  0x99   :  { %v3485_v22 = vpop.permute.xlu1 %201  ;;  %v3487_v23 = vpop.permute.xlu0 %196 }
  0x9e   :  { %v3491_v29 = vpop.permute.xlu1 %211  ;;  %v3493_v32 = vpop.permute.xlu0 %206 }
  0xa2   :  { %v423_v49 = vpop.permute.xlu1 %422  ;;  %v418_v50 = vpop.permute.xlu0 %417 }
  0xf0   :  { %v2789_v58 = vpop.f32.mrb[0].mxu0 }
  0xf1   :  { %v177_v59 = vadd.f32 %v2789_v58, %v80_v57  ;;  %v171_v60 = vpop.f32.mrb[1].mxu0  ;;  %v433_v57 = vpop.permute.xlu1 %432 }
  0xf2   :  { %v172_v61 = vadd.f32 %v171_v60, %v75_v55  ;;  %v428_v60 = vpop.permute.xlu0 %427 }
  0xf3   :  { %v191_v62 = vmax.f32 %v177_v59, 0.0 }
  0xf4   :  { %v190_v0 = vmax.f32 %v172_v61, 0.0  ;;  %v2792_v1 = vpop.f32.mrb[2].mxu0 }
  0xf5   :  { %v187_v2 = vadd.f32 %v2792_v1, %v90_v63  ;;  %v181_v3 = vpop.f32.mrb[3].mxu0 }
  0xf6   :  { %v182_v4 = vadd.f32 %v181_v3, %v85_v56  ;;  %v3049_v5 = vpack.c.bf16 %v191_v62, %v190_v0 }
  0xf7   :  { %v193_v6 = vmax.f32 %v187_v2, 0.0 }
  0xf8   :  { %v192_v13 = vmax.f32 %v182_v4, 0.0  ;;  %3050 = vmatprep.subr.bf16.mxu1 %v3049_v5  ;;  %v2552_v4 = vld [vmem:[%s3825_s2 + $0x10] sm:$0xff] }
  0xf9   :  { %3052 = vmatpush3.bf16.msra.mxu1 %v3049_v5  ;;  %v699_v5 = vstv %s698_s23 }
  0xfa   :  { %v3053_v14 = vpack.c.bf16 %v193_v6, %v192_v13  ;;  %vm700_vm5 = vcmp.eq.s32.totalorder %v699_v5, 1 }
  0xfb   :  { %v701_v6 = vsel %vm700_vm5, %v3300_v8, %v3295_v7  ;;  %v702_v13 = vsel %vm700_vm5, %v3310_v10, %v3305_v9 }
  0xfc   :  { %3054 = vmatprep.subr.bf16.mxu1 %v3053_v14 }
  0xfd   :  { %3056 = vmatpush3.bf16.msra.mxu1 %v3053_v14  ;;  %v703_v14 = vsel %vm700_vm5, %v3320_v12, %v3315_v11 }
 0x100   :  { %2802 = vmatmul.mubr.msk.f32.vlgmr.msra.gmra.mrb[0].mxu1 %vm214_vm2, %v3462_v15 }
 0x101   :  { %2804 = vmatprep.mubr.msk.f32.mxu1 %vm214_vm2, %v3467_v16 }
 0x104   :  { %2805 = vmatmul.mubr.msk.f32.gmra.mrb[2].mxu1 %vm214_vm2, %v3476_v17 }
 0x105   :  { %2834 = vmatprep.mubr.msk.f32.mxu1 %vm214_vm2, %v3455_v54 }
 0x1d3   :  { %v2803_v24 = vpop.f32.mrb[0].mxu1 }
 0x1d4   :  { %v299_v25 = vadd.f32 %v2803_v24, %v3485_v22  ;;  %v293_v26 = vpop.f32.mrb[1].mxu1  ;;  %v704_v24 = vsel %vm700_vm5, %v3352_v21, %v3347_v20 }
 0x1d5   :  { %v294_v27 = vadd.f32 %v293_v26, %v3487_v23 }
 0x1d6   :  { %v313_v28 = vmax.f32 %v299_v25, 0.0 }
 0x1d7   :  { %v312_v30 = vmax.f32 %v294_v27, 0.0  ;;  %v2806_v31 = vpop.f32.mrb[2].mxu1 }
 0x1d8   :  { %v309_v33 = vadd.f32 %v2806_v31, %v3491_v29  ;;  %v303_v34 = vpop.f32.mrb[3].mxu1 }
 0x1d9   :  { %v3058_v35 = vpack.c.bf16 %v313_v28, %v312_v30  ;;  %v304_v36 = vadd.f32 %v303_v34, %v3493_v32 }
 0x1da   :  { %v315_v37 = vmax.f32 %v309_v33, 0.0 }
 0x1db   :  { %v314_v39 = vmax.f32 %v304_v36, 0.0  ;;  %3059 = vmatpush3.bf16.msra.mxu0 %v3058_v35  ;;  %v720_v36 = vpop.permute.xlu1 %719 }
 0x1dc   :  { %3060 = vmatprep.subr.bf16.mxu0 %v3217_v18 }
 0x1dd   :  { %v3061_v40 = vpack.c.bf16 %v315_v37, %v314_v39  ;;  %v715_v39 = vpop.permute.xlu0 %714 }
 0x1df   :  { %3062 = vmatpush3.bf16.msra.mxu0 %v3061_v40 }
 0x1e0   :  { %2818 = vmatprep.subr.mxu0 %v2537_v41 }
 0x1e2   :  { %2816 = vmatmul.mubr.msk.f32.vlgmr.msra.gmra.mrb[4].mxu0 %vm214_vm2, %v3504_v42 }
 0x1e3   :  { %2819 = vmatpush3.msra.mxu0 %v2537_v41  ;;  %2820 = vmatprep.mubr.msk.f32.mxu0 %vm92_vm0, %v404_v43 }
 0x1e4   :  { %3071 = vmatprep.subr.bf16.mxu0 %v3217_v18 }
 0x1e6   :  { %2821 = vmatmul.mubr.msk.f32.vlgmr.msra.gmra.mrb[6].mxu0 %vm92_vm0, %v405_v44 }
 0x1e7   :  { %2823 = vmatprep.mubr.msk.f32.mxu0 %vm92_vm0, %v406_v45 }
 0x1ea   :  { %2824 = vmatmul.mubr.msk.f32.gmra.mrb[8].mxu0 %vm92_vm0, %v407_v46 }
 0x1eb   :  { %2848 = vmatprep.mubr.msk.f32.mxu0 %vm3218_vm3, %v3219_v19 }
 0x2b5   :  { %v3523_v47 = vpop.f32.mrb[4].mxu0 }
 0x2b6   :  { %v2817_v48 = vpop.f32.mrb[5].mxu0 }
 0x2b9   :  { %v2822_v51 = vpop.f32.mrb[6].mxu0 }
 0x2ba   :  { %v519_v52 = vadd.f32 %v2822_v51, %v423_v49  ;;  %v513_v53 = vpop.f32.mrb[7].mxu0 }
 0x2bb   :  { %v514_v55 = vadd.f32 %v513_v53, %v418_v50  ;;  %v730_v50 = vpop.permute.xlu1 %729  ;;  %v725_v53 = vpop.permute.xlu0 %724 }
 0x2bc   :  { %v533_v56 = vmax.f32 %v519_v52, 0.0 }
 0x2bd   :  { %v532_v58 = vmax.f32 %v514_v55, 0.0  ;;  %v2825_v59 = vpop.f32.mrb[8].mxu0 }
 0x2be   :  { %v529_v61 = vadd.f32 %v2825_v59, %v433_v57  ;;  %v523_v62 = vpop.f32.mrb[9].mxu0 }
 0x2bf   :  { %v3063_v63 = vpack.c.bf16 %v533_v56, %v532_v58  ;;  %v524_v0 = vadd.f32 %v523_v62, %v428_v60  ;;  %v3566_v62 = vpop.permute.xlu0 %1011 }
 0x2c0   :  { %v535_v1 = vmax.f32 %v529_v61, 0.0 }
 0x2c1   :  { %v534_v2 = vmax.f32 %v524_v0, 0.0  ;;  %3064 = vmatprep.subr.bf16.mxu1 %v3063_v63 }
 0x2c2   :  { %3066 = vmatpush3.bf16.msra.mxu1 %v3063_v63 }
 0x2c3   :  { %v3067_v3 = vpack.c.bf16 %v535_v1, %v534_v2  ;;  %v3568_v63 = vpop.permute.xlu0 %1021 }
 0x2c5   :  { %3068 = vmatprep.subr.bf16.mxu1 %v3067_v3 }
 0x2c6   :  { %3070 = vmatpush3.bf16.msra.mxu1 %v3067_v3 }
 0x2c7   :  { %2851 = vmatprep.subr.mxu1 %v2552_v4  ;;  %v3570_v0 = vpop.permute.xlu0 %1308 }
 0x2c9   :  { %2835 = vmatmul.mubr.msk.f32.vlgmr.msra.gmra.mrb[4].mxu1 %vm214_vm2, %v3462_v15 }
 0x2ca   :  { %2852 = vmatpush3.msra.mxu1 %v2552_v4  ;;  %2837 = vmatprep.mubr.msk.f32.mxu1 %vm214_vm2, %v3467_v16 }
 0x2cb   :  { %3085 = vmatprep.subr.bf16.mxu1 %v3217_v18  ;;  %v3572_v1 = vpop.permute.xlu0 %1318 }
 0x2cd   :  { %2838 = vmatmul.mubr.msk.f32.gmra.mrb[6].mxu1 %vm214_vm2, %v3476_v17 }
 0x2ce   :  { %2853 = vmatprep.mubr.msk.f32.mxu1 %vm92_vm0, %v701_v6 }
 0x2cf   :  { %v3574_v2 = vpop.permute.xlu0 %1605 }
 0x2d1   :  { %2854 = vmatmul.mubr.msk.f32.vlgmr.msra.gmra.mrb[8].mxu1 %vm92_vm0, %v702_v13  ;;  %v321_v13 = vlaneseq }
 0x2d2   :  { %2856 = vmatprep.mubr.msk.f32.mxu1 %vm92_vm0, %v703_v14 }
 0x2d3   :  { %v3576_v3 = vpop.permute.xlu0 %1615 }
 0x2d5   :  { %2857 = vmatmul.mubr.msk.f32.gmra.mrb[10].mxu1 %vm92_vm0, %v704_v24  ;;  %v322_v24 = vshrl.u32 %v321_v13, 7 }
 0x2d6   :  { %2881 = vmatprep.mubr.msk.f32.mxu1 %vm3218_vm3, %v3219_v19 }
 0x2d7   :  { %v3578_v4 = vpop.permute.xlu0 %1902 }
 0x2db   :  { %v3580_v5 = vpop.permute.xlu0 %1912 }
 0x2df   :  { %v3582_v6 = vpop.permute.xlu0 %2199 }
 0x2e3   :  { %v3584_v14 = vpop.permute.xlu0 %2209 }
 0x39c   :  { %v2836_v25 = vpop.f32.mrb[4].mxu1 }
 0x39d   :  { %v608_v26 = vadd.f32 %v2836_v25, %v3485_v22  ;;  %v602_v27 = vpop.f32.mrb[5].mxu1  ;;  %v323_v25 = vsub.s32 0, %v322_v24 }
 0x39e   :  { %v603_v28 = vadd.f32 %v602_v27, %v3487_v23 }
 0x39f   :  { %v622_v30 = vmax.f32 %v608_v26, 0.0  ;;  %v319_v26 = vpop.permute.xlu0 %318 }
 0x3a0   :  { %v621_v31 = vmax.f32 %v603_v28, 0.0  ;;  %v2839_v33 = vpop.f32.mrb[6].mxu1  ;;  %v3586_v27 = vrot.slane %v319_v26, %v323_v25 }
 0x3a1   :  { %v618_v34 = vadd.f32 %v2839_v33, %v3491_v29  ;;  %v612_v35 = vpop.f32.mrb[7].mxu1 }
 0x3a2   :  { %v3072_v37 = vpack.c.bf16 %v622_v30, %v621_v31  ;;  %v613_v38 = vadd.f32 %v612_v35, %v3493_v32  ;;  %v395_v33 = vadd.f32 %v3523_v47, %v3586_v27 }
 0x3a3   :  { %v624_v40 = vmax.f32 %v618_v34, 0.0 }
 0x3a4   :  { %v623_v41 = vmax.f32 %v613_v38, 0.0  ;;  %3073 = vmatpush3.bf16.msra.mxu0 %v3072_v37  ;;  %v2855_v43 = vpop.f32.mrb[8].mxu1 }
 0x3a5   :  { %v816_v44 = vadd.f32 %v2855_v43, %v720_v36  ;;  %v810_v45 = vpop.f32.mrb[9].mxu1  ;;  %3074 = vmatprep.subr.bf16.mxu0 %v3217_v18 }
 0x3a6   :  { %v3075_v46 = vpack.c.bf16 %v624_v40, %v623_v41  ;;  %v811_v48 = vadd.f32 %v810_v45, %v715_v39 }
 0x3a7   :  { %v830_v49 = vmax.f32 %v816_v44, 0.0 }
 0x3a8   :  { %v829_v51 = vmax.f32 %v811_v48, 0.0  ;;  %3076 = vmatpush3.bf16.msra.mxu0 %v3075_v46  ;;  %v2858_v52 = vpop.f32.mrb[10].mxu1 }
 0x3a9   :  { %v826_v55 = vadd.f32 %v2858_v52, %v730_v50  ;;  %v820_v56 = vpop.f32.mrb[11].mxu1  ;;  %v2567_v52 = vld [vmem:[%s3825_s2 + $0x18] sm:$0xff] }
 0x3aa   :  { %v3077_v57 = vpack.c.bf16 %v830_v49, %v829_v51  ;;  %v821_v58 = vadd.f32 %v820_v56, %v725_v53  ;;  %v996_v49 = vstv %s995_s27 }
 0x3ab   :  { %v832_v59 = vmax.f32 %v826_v55, 0.0  ;;  %2849 = vmatmul.mubr.msk.f32.vlgmr.msra.gmra.mrb[10].mxu0 %vm214_vm2, %v3504_v42  ;;  %vm997_vm7 = vcmp.eq.s32.totalorder %v996_v49, 1 }
 0x3ac   :  { %v831_v60 = vmax.f32 %v821_v58, 0.0  ;;  %3078 = vmatprep.subr.bf16.mxu0 %v3077_v57  ;;  %2867 = vmatprep.mubr.msk.f32.mxu0 %vm214_vm2, %v3455_v54  ;;  %v998_v53 = vsel %vm997_vm7, %v3300_v8, %v3295_v7  ;;  %v999_v55 = vsel %vm997_vm7, %v3310_v10, %v3305_v9  ;;  %v1000_v56 = vsel %vm997_vm7, %v3320_v12, %v3315_v11 }
 0x3ad   :  { %3080 = vmatpush3.bf16.msra.mxu0 %v3077_v57  ;;  %v1001_v57 = vsel %vm997_vm7, %v3352_v21, %v3347_v20 }
 0x3ae   :  { %v3081_v61 = vpack.c.bf16 %v832_v59, %v831_v60 }
 0x3b0   :  { %3082 = vmatprep.subr.bf16.mxu0 %v3081_v61 }
 0x3b1   :  { %3084 = vmatpush3.bf16.msra.mxu0 %v3081_v61  ;;  %v1017_v61 = vpop.permute.xlu1 %1016 }
 0x3b4   :  { %2868 = vmatmul.mubr.msk.f32.vlgmr.msra.gmra.mrb[12].mxu0 %vm214_vm2, %v3462_v15 }
 0x3b5   :  { %2870 = vmatprep.mubr.msk.f32.mxu0 %vm214_vm2, %v3467_v16 }
 0x3b8   :  { %2871 = vmatmul.mubr.msk.f32.gmra.mrb[14].mxu0 %vm214_vm2, %v3476_v17 }
 0x3b9   :  { %2900 = vmatprep.mubr.msk.f32.mxu0 %vm214_vm2, %v3455_v54 }
 0x47e   :  { %v691_v28 = vpop.f32.mrb[10].mxu0 }
 0x47f   :  { %v692_v30 = vadd.f32 %v691_v28, %v3586_v27  ;;  %v2850_v31 = vpop.f32.mrb[11].mxu0 }
 0x481   :  { %v2478_v34 = vrot.slane %v692_v30, 7 }
 0x483   :  { %v2499_v35 = vsel %vm2498_vm6, %v395_v33, %v2478_v34  ;;  %v1027_v33 = vpop.permute.xlu1 %1026 }
 0x487   :  { %v2869_v36 = vpop.f32.mrb[12].mxu0 }
 0x488   :  { %v905_v37 = vadd.f32 %v2869_v36, %v3485_v22  ;;  %v899_v38 = vpop.f32.mrb[13].mxu0 }
 0x489   :  { %v900_v39 = vadd.f32 %v899_v38, %v3487_v23 }
 0x48a   :  { %v919_v40 = vmax.f32 %v905_v37, 0.0 }
 0x48b   :  { %v918_v41 = vmax.f32 %v900_v39, 0.0  ;;  %v2872_v43 = vpop.f32.mrb[14].mxu0 }
 0x48c   :  { %v915_v44 = vadd.f32 %v2872_v43, %v3491_v29  ;;  %v909_v45 = vpop.f32.mrb[15].mxu0 }
 0x48d   :  { %v3086_v46 = vpack.c.bf16 %v919_v40, %v918_v41  ;;  %v910_v48 = vadd.f32 %v909_v45, %v3493_v32 }
 0x48e   :  { %v921_v47 = vmax.f32 %v915_v44, 0.0  ;;  %v1293_v44 = vstv %s1292_s6 }
 0x48f   :  { %v920_v50 = vmax.f32 %v910_v48, 0.0  ;;  %3087 = vmatpush3.bf16.msra.mxu1 %v3086_v46  ;;  %vm1294_vm9 = vcmp.eq.s32.totalorder %v1293_v44, 1 }
 0x490   :  { %3088 = vmatprep.subr.bf16.mxu1 %v3217_v18  ;;  %v1296_v45 = vsel %vm1294_vm9, %v3310_v10, %v3305_v9  ;;  %v1297_v46 = vsel %vm1294_vm9, %v3320_v12, %v3315_v11  ;;  %v1298_v48 = vsel %vm1294_vm9, %v3352_v21, %v3347_v20 }
 0x491   :  { %v3089_v51 = vpack.c.bf16 %v921_v47, %v920_v50 }
 0x493   :  { %3090 = vmatpush3.bf16.msra.mxu1 %v3089_v51 }
 0x494   :  { %2884 = vmatprep.subr.mxu1 %v2567_v52 }
 0x496   :  { %2882 = vmatmul.mubr.msk.f32.vlgmr.msra.gmra.mrb[12].mxu1 %vm214_vm2, %v3504_v42 }
 0x497   :  { %2885 = vmatpush3.msra.mxu1 %v2567_v52  ;;  %2886 = vmatprep.mubr.msk.f32.mxu1 %vm92_vm0, %v998_v53 }
 0x498   :  { %3099 = vmatprep.subr.bf16.mxu1 %v3217_v18 }
 0x49a   :  { %2887 = vmatmul.mubr.msk.f32.vlgmr.msra.gmra.mrb[14].mxu1 %vm92_vm0, %v999_v55 }
 0x49b   :  { %2889 = vmatprep.mubr.msk.f32.mxu1 %vm92_vm0, %v1000_v56 }
 0x49e   :  { %2890 = vmatmul.mubr.msk.f32.gmra.mrb[16].mxu1 %vm92_vm0, %v1001_v57 }
 0x49f   :  { %2914 = vmatprep.mubr.msk.f32.mxu1 %vm3218_vm3, %v3219_v19 }
 0x569   :  { %v988_v58 = vpop.f32.mrb[12].mxu1 }
 0x56a   :  { %v989_v59 = vadd.f32 %v988_v58, %v3586_v27  ;;  %v2883_v60 = vpop.f32.mrb[13].mxu1  ;;  %v1314_v58 = vpop.permute.xlu1 %1313 }
 0x56c   :  { %v2481_v13 = vrot.slane %v989_v59, 6 }
 0x56d   :  { %v2888_v24 = vpop.f32.mrb[14].mxu1 }
 0x56e   :  { %v3617_v25 = vsel %vm2500_vm8, %v2499_v35, %v2481_v13  ;;  %v1113_v26 = vadd.f32 %v2888_v24, %v1017_v61  ;;  %v1107_v28 = vpop.f32.mrb[15].mxu1 }
 0x56f   :  { %v1108_v30 = vadd.f32 %v1107_v28, %v3566_v62  ;;  %v2582_v62 = vld [vmem:[%s3825_s2 + $0x20] sm:$0xff] }
 0x570   :  { %v1127_v31 = vmax.f32 %v1113_v26, 0.0 }
 0x571   :  { %v1126_v34 = vmax.f32 %v1108_v30, 0.0  ;;  %v2891_v36 = vpop.f32.mrb[16].mxu1 }
 0x572   :  { %v1123_v37 = vadd.f32 %v2891_v36, %v1027_v33  ;;  %v1117_v38 = vpop.f32.mrb[17].mxu1 }
 0x573   :  { %v3091_v39 = vpack.c.bf16 %v1127_v31, %v1126_v34  ;;  %v1118_v40 = vadd.f32 %v1117_v38, %v3568_v63  ;;  %v1295_v63 = vsel %vm1294_vm9, %v3300_v8, %v3295_v7  ;;  %v1324_v34 = vpop.permute.xlu1 %1323 }
 0x574   :  { %v1129_v41 = vmax.f32 %v1123_v37, 0.0 }
 0x575   :  { %v1128_v43 = vmax.f32 %v1118_v40, 0.0  ;;  %3092 = vmatprep.subr.bf16.mxu0 %v3091_v39 }
 0x576   :  { %3094 = vmatpush3.bf16.msra.mxu0 %v3091_v39 }
 0x577   :  { %v3095_v35 = vpack.c.bf16 %v1129_v41, %v1128_v43 }
 0x579   :  { %3096 = vmatprep.subr.bf16.mxu0 %v3095_v35 }
 0x57a   :  { %3098 = vmatpush3.bf16.msra.mxu0 %v3095_v35 }
 0x57b   :  { %2917 = vmatprep.subr.mxu0 %v2582_v62 }
 0x57d   :  { %2901 = vmatmul.mubr.msk.f32.vlgmr.msra.gmra.mrb[16].mxu0 %vm214_vm2, %v3462_v15 }
 0x57e   :  { %2918 = vmatpush3.msra.mxu0 %v2582_v62  ;;  %2903 = vmatprep.mubr.msk.f32.mxu0 %vm214_vm2, %v3467_v16 }
 0x57f   :  { %3113 = vmatprep.subr.bf16.mxu0 %v3217_v18 }
 0x581   :  { %2904 = vmatmul.mubr.msk.f32.gmra.mrb[18].mxu0 %vm214_vm2, %v3476_v17 }
 0x582   :  { %2919 = vmatprep.mubr.msk.f32.mxu0 %vm92_vm0, %v1295_v63 }
 0x585   :  { %2920 = vmatmul.mubr.msk.f32.vlgmr.msra.gmra.mrb[20].mxu0 %vm92_vm0, %v1296_v45 }
 0x586   :  { %2922 = vmatprep.mubr.msk.f32.mxu0 %vm92_vm0, %v1297_v46 }
 0x589   :  { %2923 = vmatmul.mubr.msk.f32.gmra.mrb[22].mxu0 %vm92_vm0, %v1298_v48 }
 0x58a   :  { %2947 = vmatprep.mubr.msk.f32.mxu0 %vm3218_vm3, %v3219_v19 }
 0x650   :  { %v2902_v47 = vpop.f32.mrb[16].mxu0 }
 0x651   :  { %v1202_v49 = vadd.f32 %v2902_v47, %v3485_v22  ;;  %v1196_v50 = vpop.f32.mrb[17].mxu0 }
 0x652   :  { %v1197_v51 = vadd.f32 %v1196_v50, %v3487_v23 }
 0x653   :  { %v1216_v52 = vmax.f32 %v1202_v49, 0.0 }
 0x654   :  { %v1215_v53 = vmax.f32 %v1197_v51, 0.0  ;;  %v2905_v55 = vpop.f32.mrb[18].mxu0 }
 0x655   :  { %v1212_v56 = vadd.f32 %v2905_v55, %v3491_v29  ;;  %v1206_v57 = vpop.f32.mrb[19].mxu0 }
 0x656   :  { %v3100_v59 = vpack.c.bf16 %v1216_v52, %v1215_v53  ;;  %v1207_v60 = vadd.f32 %v1206_v57, %v3493_v32 }
 0x657   :  { %v1218_v61 = vmax.f32 %v1212_v56, 0.0 }
 0x658   :  { %v1217_v13 = vmax.f32 %v1207_v60, 0.0  ;;  %3101 = vmatpush3.bf16.msra.mxu1 %v3100_v59  ;;  %v2921_v24 = vpop.f32.mrb[20].mxu0  ;;  %v1590_v59 = vstv %s1589_s13 }
 0x659   :  { %v1410_v26 = vadd.f32 %v2921_v24, %v1314_v58  ;;  %v1404_v28 = vpop.f32.mrb[21].mxu0  ;;  %3102 = vmatprep.subr.bf16.mxu1 %v3217_v18  ;;  %vm1591_vm11 = vcmp.eq.s32.totalorder %v1590_v59, 1 }
 0x65a   :  { %v3103_v30 = vpack.c.bf16 %v1218_v61, %v1217_v13  ;;  %v1405_v31 = vadd.f32 %v1404_v28, %v3570_v0  ;;  %v2597_v61 = vld [vmem:[%s3825_s2 + $0x28] sm:$0xff]  ;;  %v1592_v13 = vsel %vm1591_vm11, %v3300_v8, %v3295_v7  ;;  %v1593_v24 = vsel %vm1591_vm11, %v3310_v10, %v3305_v9 }
 0x65b   :  { %v1424_v33 = vmax.f32 %v1410_v26, 0.0  ;;  %v1594_v26 = vsel %vm1591_vm11, %v3320_v12, %v3315_v11  ;;  %v1595_v28 = vsel %vm1591_vm11, %v3352_v21, %v3347_v20 }
 0x65c   :  { %v1423_v36 = vmax.f32 %v1405_v31, 0.0  ;;  %3104 = vmatpush3.bf16.msra.mxu1 %v3103_v30  ;;  %v2924_v37 = vpop.f32.mrb[22].mxu0 }
 0x65d   :  { %v1420_v38 = vadd.f32 %v2924_v37, %v1324_v34  ;;  %v1414_v39 = vpop.f32.mrb[23].mxu0  ;;  %v1611_v34 = vpop.permute.xlu1 %1610 }
 0x65e   :  { %v3105_v40 = vpack.c.bf16 %v1424_v33, %v1423_v36  ;;  %v1415_v41 = vadd.f32 %v1414_v39, %v3572_v1 }
 0x65f   :  { %v1426_v43 = vmax.f32 %v1420_v38, 0.0  ;;  %2915 = vmatmul.mubr.msk.f32.vlgmr.msra.gmra.mrb[18].mxu1 %vm214_vm2, %v3504_v42 }
 0x660   :  { %v1425_v35 = vmax.f32 %v1415_v41, 0.0  ;;  %3106 = vmatprep.subr.bf16.mxu1 %v3105_v40  ;;  %2933 = vmatprep.mubr.msk.f32.mxu1 %vm214_vm2, %v3455_v54 }
 0x661   :  { %3108 = vmatpush3.bf16.msra.mxu1 %v3105_v40 }
 0x662   :  { %v3109_v0 = vpack.c.bf16 %v1426_v43, %v1425_v35  ;;  %v1621_v35 = vpop.permute.xlu1 %1620 }
 0x664   :  { %3110 = vmatprep.subr.bf16.mxu1 %v3109_v0 }
 0x665   :  { %3112 = vmatpush3.bf16.msra.mxu1 %v3109_v0 }
 0x668   :  { %2934 = vmatmul.mubr.msk.f32.vlgmr.msra.gmra.mrb[20].mxu1 %vm214_vm2, %v3462_v15 }
 0x669   :  { %2936 = vmatprep.mubr.msk.f32.mxu1 %vm214_vm2, %v3467_v16 }
 0x66c   :  { %2937 = vmatmul.mubr.msk.f32.gmra.mrb[22].mxu1 %vm214_vm2, %v3476_v17 }
 0x66d   :  { %2966 = vmatprep.mubr.msk.f32.mxu1 %vm214_vm2, %v3455_v54 }
 0x732   :  { %v1285_v1 = vpop.f32.mrb[18].mxu1 }
 0x733   :  { %v1286_v62 = vadd.f32 %v1285_v1, %v3586_v27  ;;  %v2916_v44 = vpop.f32.mrb[19].mxu1 }
 0x735   :  { %v2484_v63 = vrot.slane %v1286_v62, 5 }
 0x737   :  { %v2503_v45 = vsel %vm2502_vm10, %v3617_v25, %v2484_v63 }
 0x73b   :  { %v2935_v46 = vpop.f32.mrb[20].mxu1 }
 0x73c   :  { %v1499_v48 = vadd.f32 %v2935_v46, %v3485_v22  ;;  %v1493_v47 = vpop.f32.mrb[21].mxu1 }
 0x73d   :  { %v1494_v49 = vadd.f32 %v1493_v47, %v3487_v23 }
 0x73e   :  { %v1513_v50 = vmax.f32 %v1499_v48, 0.0 }
 0x73f   :  { %v1512_v51 = vmax.f32 %v1494_v49, 0.0  ;;  %v2938_v52 = vpop.f32.mrb[22].mxu1  ;;  %v1887_v49 = vstv %s1886_s16 }
 0x740   :  { %v1509_v53 = vadd.f32 %v2938_v52, %v3491_v29  ;;  %v1503_v55 = vpop.f32.mrb[23].mxu1  ;;  %vm1888_vm13 = vcmp.eq.s32.totalorder %v1887_v49, 1 }
 0x741   :  { %v3114_v56 = vpack.c.bf16 %v1513_v50, %v1512_v51  ;;  %v1504_v57 = vadd.f32 %v1503_v55, %v3493_v32  ;;  %v1890_v50 = vsel %vm1888_vm13, %v3310_v10, %v3305_v9  ;;  %v1891_v51 = vsel %vm1888_vm13, %v3320_v12, %v3315_v11 }
 0x742   :  { %v1515_v58 = vmax.f32 %v1509_v53, 0.0 }
 0x743   :  { %v1514_v25 = vmax.f32 %v1504_v57, 0.0  ;;  %3115 = vmatpush3.bf16.msra.mxu0 %v3114_v56  ;;  %v1908_v57 = vpop.permute.xlu1 %1907 }
 0x744   :  { %3116 = vmatprep.subr.bf16.mxu0 %v3217_v18 }
 0x745   :  { %v3117_v60 = vpack.c.bf16 %v1515_v58, %v1514_v25 }
 0x747   :  { %3118 = vmatpush3.bf16.msra.mxu0 %v3117_v60 }
 0x748   :  { %2950 = vmatprep.subr.mxu0 %v2597_v61 }
 0x74a   :  { %2948 = vmatmul.mubr.msk.f32.vlgmr.msra.gmra.mrb[24].mxu0 %vm214_vm2, %v3504_v42 }
 0x74b   :  { %2951 = vmatpush3.msra.mxu0 %v2597_v61  ;;  %2952 = vmatprep.mubr.msk.f32.mxu0 %vm92_vm0, %v1592_v13 }
 0x74c   :  { %3127 = vmatprep.subr.bf16.mxu0 %v3217_v18 }
 0x74e   :  { %2953 = vmatmul.mubr.msk.f32.vlgmr.msra.gmra.mrb[26].mxu0 %vm92_vm0, %v1593_v24 }
 0x74f   :  { %2955 = vmatprep.mubr.msk.f32.mxu0 %vm92_vm0, %v1594_v26 }
 0x752   :  { %2956 = vmatmul.mubr.msk.f32.gmra.mrb[28].mxu0 %vm92_vm0, %v1595_v28  ;;  %v1918_v28 = vpop.permute.xlu1 %1917 }
 0x753   :  { %2980 = vmatprep.mubr.msk.f32.mxu0 %vm3218_vm3, %v3219_v19 }
 0x81d   :  { %v1582_v30 = vpop.f32.mrb[24].mxu0 }
 0x81e   :  { %v1583_v31 = vadd.f32 %v1582_v30, %v3586_v27  ;;  %v2949_v33 = vpop.f32.mrb[25].mxu0 }
 0x820   :  { %v2487_v36 = vrot.slane %v1583_v31, 4 }
 0x821   :  { %v2954_v37 = vpop.f32.mrb[26].mxu0 }
 0x822   :  { %v3692_v38 = vsel %vm2504_vm12, %v2503_v45, %v2487_v36  ;;  %v1707_v39 = vadd.f32 %v2954_v37, %v1611_v34  ;;  %v1701_v40 = vpop.f32.mrb[27].mxu0 }
 0x823   :  { %v1702_v41 = vadd.f32 %v1701_v40, %v3574_v2  ;;  %v2612_v2 = vld [vmem:[%s3825_s2 + $0x30] sm:$0xff] }
 0x824   :  { %v1721_v43 = vmax.f32 %v1707_v39, 0.0 }
 0x825   :  { %v1720_v0 = vmax.f32 %v1702_v41, 0.0  ;;  %v2957_v1 = vpop.f32.mrb[28].mxu0 }
 0x826   :  { %v1717_v62 = vadd.f32 %v2957_v1, %v1621_v35  ;;  %v1711_v44 = vpop.f32.mrb[29].mxu0 }
 0x827   :  { %v3119_v63 = vpack.c.bf16 %v1721_v43, %v1720_v0  ;;  %v1712_v46 = vadd.f32 %v1711_v44, %v3576_v3  ;;  %v1889_v3 = vsel %vm1888_vm13, %v3300_v8, %v3295_v7  ;;  %v1892_v7 = vsel %vm1888_vm13, %v3352_v21, %v3347_v20 }
 0x828   :  { %v1723_v48 = vmax.f32 %v1717_v62, 0.0 }
 0x829   :  { %v1722_v47 = vmax.f32 %v1712_v46, 0.0  ;;  %3120 = vmatprep.subr.bf16.mxu1 %v3119_v63 }
 0x82a   :  { %3122 = vmatpush3.bf16.msra.mxu1 %v3119_v63 }
 0x82b   :  { %v3123_v45 = vpack.c.bf16 %v1723_v48, %v1722_v47 }
 0x82d   :  { %3124 = vmatprep.subr.bf16.mxu1 %v3123_v45 }
 0x82e   :  { %3126 = vmatpush3.bf16.msra.mxu1 %v3123_v45 }
 0x82f   :  { %2983 = vmatprep.subr.mxu1 %v2612_v2 }
 0x831   :  { %2967 = vmatmul.mubr.msk.f32.vlgmr.msra.gmra.mrb[24].mxu1 %vm214_vm2, %v3462_v15 }
 0x832   :  { %2984 = vmatpush3.msra.mxu1 %v2612_v2  ;;  %2969 = vmatprep.mubr.msk.f32.mxu1 %vm214_vm2, %v3467_v16 }
 0x833   :  { %3141 = vmatprep.subr.bf16.mxu1 %v3217_v18 }
 0x835   :  { %2970 = vmatmul.mubr.msk.f32.gmra.mrb[26].mxu1 %vm214_vm2, %v3476_v17 }
 0x836   :  { %2985 = vmatprep.mubr.msk.f32.mxu1 %vm92_vm0, %v1889_v3 }
 0x839   :  { %2986 = vmatmul.mubr.msk.f32.vlgmr.msra.gmra.mrb[28].mxu1 %vm92_vm0, %v1890_v50  ;;  %v2184_v50 = vstv %s2183_s18 }
 0x83a   :  { %2988 = vmatprep.mubr.msk.f32.mxu1 %vm92_vm0, %v1891_v51  ;;  %vm3749_vm15 = vcmp.eq.s32.totalorder %v2184_v50, 1 }
 0x83d   :  { %2989 = vmatmul.mubr.msk.f32.gmra.mrb[30].mxu1 %vm92_vm0, %v1892_v7  ;;  %v2627_v7 = vld [vmem:[%s3825_s2 + $0x38] sm:$0xff] }
 0x83e   :  { %3013 = vmatprep.mubr.msk.f32.mxu1 %vm3218_vm3, %v3219_v19 }
 0x904   :  { %v2968_v8 = vpop.f32.mrb[24].mxu1 }
 0x905   :  { %v1796_v52 = vadd.f32 %v2968_v8, %v3485_v22  ;;  %v1790_v53 = vpop.f32.mrb[25].mxu1 }
 0x906   :  { %v1791_v9 = vadd.f32 %v1790_v53, %v3487_v23  ;;  %v3170_v53 = vld [vmem:[%s3827_s4] sm:$0xff] }
 0x907   :  { %v1810_v10 = vmax.f32 %v1796_v52, 0.0  ;;  %v3169_v52 = vld [vmem:[%s3826_s3] sm:$0xff] }
 0x908   :  { %v1809_v11 = vmax.f32 %v1791_v9, 0.0  ;;  %v2971_v12 = vpop.f32.mrb[26].mxu1  ;;  %v2186_v9 = vsel %vm3749_vm15, %v3170_v53, %v3169_v52 }
 0x909   :  { %v1806_v55 = vadd.f32 %v2971_v12, %v3491_v29  ;;  %v1800_v56 = vpop.f32.mrb[27].mxu1 }
 0x90a   :  { %v3128_v58 = vpack.c.bf16 %v1810_v10, %v1809_v11  ;;  %v1801_v20 = vadd.f32 %v1800_v56, %v3493_v32  ;;  %v3171_v10 = vld [vmem:[%s3826_s3 + $0x8] sm:$0xff]  ;;  %v3174_v56 = vld [vmem:[%s3827_s4 + $0x10] sm:$0xff] }
 0x90b   :  { %v1812_v21 = vmax.f32 %v1806_v55, 0.0  ;;  %v3172_v11 = vld [vmem:[%s3827_s4 + $0x8] sm:$0xff]  ;;  %v3173_v55 = vld [vmem:[%s3826_s3 + $0x10] sm:$0xff] }
 0x90c   :  { %v1811_v59 = vmax.f32 %v1801_v20, 0.0  ;;  %3129 = vmatpush3.bf16.msra.mxu0 %v3128_v58  ;;  %v2987_v25 = vpop.f32.mrb[28].mxu1  ;;  %v2187_v12 = vsel %vm3749_vm15, %v3172_v11, %v3171_v10  ;;  %v3175_v58 = vld [vmem:[%s3826_s3 + $0x18] sm:$0xff]  ;;  %s3220_s3 = smov [#allocation5]  }
 0x90d   :  { %v2004_v60 = vadd.f32 %v2987_v25, %v1908_v57  ;;  %v1998_v61 = vpop.f32.mrb[29].mxu1  ;;  %3130 = vmatprep.subr.bf16.mxu0 %v3217_v18  ;;  %v2188_v57 = vsel %vm3749_vm15, %v3174_v56, %v3173_v55  ;;  %v3176_v20 = vld [vmem:[%s3827_s4 + $0x18] sm:$0xff]  ;;  %s2519_s4 = sshll.u32 %s3220_s3, 4  ;;  %s2520_s4 = int_to_ptr.vmem [resolvable:$true] %s2519_s4 }
 0x90e   :  { %v3131_v13 = vpack.c.bf16 %v1812_v21, %v1811_v59  ;;  %v1999_v24 = vadd.f32 %v1998_v61, %v3578_v4  ;;  %v2189_v21 = vsel %vm3749_vm15, %v3176_v20, %v3175_v58  ;;  %v2205_v61 = vpop.permute.xlu1 %2204  ;;  %s3189_s12 = scalar_lea.vmem %s2520_s4, 128  ;;  %p3194_p0 = scmp.lt.s32.totalorder %s2520_s4, %s2520_s4 }
 0x90f   :  { %v2018_v26 = vmax.f32 %v2004_v60, 0.0  ;;  %p3190_p13 = scmp.ne.s32.totalorder %s2520_s4, %s3189_s12  ;;  %p3195_p1 = scmp.lt.s32.totalorder %s3189_s12, %s3189_s12 }
 0x910   :  { %v2017_v30 = vmax.f32 %v1999_v24, 0.0  ;;  %3132 = vmatpush3.bf16.msra.mxu0 %v3131_v13  ;;  %v2990_v31 = vpop.f32.mrb[30].mxu1 }
 0x911   :  { %v2014_v33 = vadd.f32 %v2990_v31, %v1918_v28  ;;  %v2008_v34 = vpop.f32.mrb[31].mxu1  ;;  %p3196_p2 = por %p3195_p1, %p3194_p0 }
 0x912   :  { %v3133_v36 = vpack.c.bf16 %v2018_v26, %v2017_v30  ;;  %v2009_v37 = vadd.f32 %v2008_v34, %v3580_v5  ;;  %v2215_v34 = vpop.permute.xlu1 %2214 }
 0x913   :  { %v2020_v39 = vmax.f32 %v2014_v33, 0.0  ;;  %2981 = vmatmul.mubr.msk.f32.vlgmr.msra.gmra.mrb[30].mxu0 %vm214_vm2, %v3504_v42  ;;  %p3197_p3 = pnand %p3196_p2, %p3190_p13 }
 0x914   :  { %v2019_v40 = vmax.f32 %v2009_v37, 0.0  ;;  %3134 = vmatprep.subr.bf16.mxu0 %v3133_v36  ;;  %2999 = vmatprep.mubr.msk.f32.mxu0 %vm214_vm2, %v3455_v54 }
 0x915   :  { %3136 = vmatpush3.bf16.msra.mxu0 %v3133_v36 }
 0x916   :  { %v3137_v4 = vpack.c.bf16 %v2020_v39, %v2019_v40 }
 0x918   :  { %3138 = vmatprep.subr.bf16.mxu0 %v3137_v4 }
 0x919   :  { %3140 = vmatpush3.bf16.msra.mxu0 %v3137_v4 }
 0x91c   :  { %3000 = vmatmul.mubr.msk.f32.vlgmr.msra.gmra.mrb[32].mxu0 %vm214_vm2, %v3462_v15 }
 0x91d   :  { %3002 = vmatprep.mubr.msk.f32.mxu0 %vm214_vm2, %v3467_v16 }
 0x920   :  { %3003 = vmatmul.mubr.msk.f32.gmra.mrb[34].mxu0 %vm214_vm2, %v3476_v17 }
 0x921   :  { %3032 = vmatprep.mubr.msk.f32.mxu0 %vm214_vm2, %v3455_v54 }
 0x9e6   :  { %v1879_v5 = vpop.f32.mrb[30].mxu0 }
 0x9e7   :  { %v1880_v41 = vadd.f32 %v1879_v5, %v3586_v27  ;;  %v2982_v43 = vpop.f32.mrb[31].mxu0 }
 0x9e9   :  { %v2490_v35 = vrot.slane %v1880_v41, 3 }
 0x9eb   :  { %v2507_v0 = vsel %vm2506_vm14, %v3692_v38, %v2490_v35 }
 0x9ef   :  { %v3001_v1 = vpop.f32.mrb[32].mxu0 }
 0x9f0   :  { %v2093_v62 = vadd.f32 %v3001_v1, %v3485_v22  ;;  %v2087_v44 = vpop.f32.mrb[33].mxu0 }
 0x9f1   :  { %v2088_v63 = vadd.f32 %v2087_v44, %v3487_v23 }
 0x9f2   :  { %v2107_v46 = vmax.f32 %v2093_v62, 0.0 }
 0x9f3   :  { %v2106_v48 = vmax.f32 %v2088_v63, 0.0  ;;  %v3004_v54 = vpop.f32.mrb[34].mxu0 }
 0x9f4   :  { %v2103_v47 = vadd.f32 %v3004_v54, %v3491_v29  ;;  %v2097_v45 = vpop.f32.mrb[35].mxu0 }
 0x9f5   :  { %v3142_v2 = vpack.c.bf16 %v2107_v46, %v2106_v48  ;;  %v2098_v49 = vadd.f32 %v2097_v45, %v3493_v32 }
 0x9f6   :  { %v2109_v3 = vmax.f32 %v2103_v47, 0.0 }
 0x9f7   :  { %v2108_v38 = vmax.f32 %v2098_v49, 0.0  ;;  %3143 = vmatpush3.bf16.msra.mxu1 %v3142_v2 }
 0x9f8   :  { %3144 = vmatprep.subr.bf16.mxu1 %v3217_v18 }
 0x9f9   :  { %v3145_v51 = vpack.c.bf16 %v2109_v3, %v2108_v38 }
 0x9fb   :  { %3146 = vmatpush3.bf16.msra.mxu1 %v3145_v51 }
 0x9fc   :  { %3016 = vmatprep.subr.mxu1 %v2627_v7 }
 0x9fe   :  { %3014 = vmatmul.mubr.msk.f32.vlgmr.msra.gmra.mrb[32].mxu1 %vm214_vm2, %v3504_v42 }
 0x9ff   :  { %3017 = vmatpush3.msra.mxu1 %v2627_v7  ;;  %3018 = vmatprep.mubr.msk.f32.mxu1 %vm92_vm0, %v2186_v9 }
 0xa00   :  { %3155 = vmatprep.subr.bf16.mxu1 %v3217_v18 }
 0xa02   :  { %3019 = vmatmul.mubr.msk.f32.vlgmr.msra.gmra.mrb[34].mxu1 %vm92_vm0, %v2187_v12 }
 0xa03   :  { %3021 = vmatprep.mubr.msk.f32.mxu1 %vm92_vm0, %v2188_v57 }
 0xa06   :  { %3022 = vmatmul.mubr.msk.f32.gmra.mrb[36].mxu1 %vm92_vm0, %v2189_v21  ;;  %vm2510_vm0 = vcmask 1046528  }
 0xa07   :  { %3046 = vmatprep.mubr.msk.f32.mxu1 %vm3218_vm3, %v3219_v19 }
 0xad1   :  { %v2176_v59 = vpop.f32.mrb[32].mxu1 }
 0xad2   :  { %v2177_v25 = vadd.f32 %v2176_v59, %v3586_v27  ;;  %v3015_v60 = vpop.f32.mrb[33].mxu1 }
 0xad4   :  { %v2493_v13 = vrot.slane %v2177_v25, 2 }
 0xad5   :  { %v3020_v24 = vpop.f32.mrb[34].mxu1 }
 0xad6   :  { %v2301_v26 = vadd.f32 %v3020_v24, %v2205_v61  ;;  %v2295_v28 = vpop.f32.mrb[35].mxu1  ;;  %v2509_v30 = vsel %vm2508_vm1, %v2507_v0, %v2493_v13 }
 0xad7   :  { %v2296_v31 = vadd.f32 %v2295_v28, %v3582_v6 }
 0xad8   :  { %v2315_v33 = vmax.f32 %v2301_v26, 0.0 }
 0xad9   :  { %v2314_v36 = vmax.f32 %v2296_v31, 0.0  ;;  %v3023_v37 = vpop.f32.mrb[36].mxu1 }
 0xada   :  { %v2311_v39 = vadd.f32 %v3023_v37, %v2215_v34  ;;  %v2305_v40 = vpop.f32.mrb[37].mxu1 }
 0xadb   :  { %v3147_v19 = vpack.c.bf16 %v2315_v33, %v2314_v36  ;;  %v2306_v4 = vadd.f32 %v2305_v40, %v3584_v14 }
 0xadc   :  { %v2317_v5 = vmax.f32 %v2311_v39, 0.0 }
 0xadd   :  { %v2316_v41 = vmax.f32 %v2306_v4, 0.0  ;;  %3148 = vmatprep.subr.bf16.mxu0 %v3147_v19 }
 0xade   :  { %3150 = vmatpush3.bf16.msra.mxu0 %v3147_v19 }
 0xadf   :  { %v3151_v43 = vpack.c.bf16 %v2317_v5, %v2316_v41 }
 0xae1   :  { %3152 = vmatprep.subr.bf16.mxu0 %v3151_v43 }
 0xae2   :  { %3154 = vmatpush3.bf16.msra.mxu0 %v3151_v43 }
 0xae5   :  { %3033 = vmatmul.mubr.msk.f32.vlgmr.msra.gmra.mrb[36].mxu0 %vm214_vm2, %v3462_v15 }
 0xae6   :  { %3035 = vmatprep.mubr.msk.f32.mxu0 %vm214_vm2, %v3467_v16 }
 0xae9   :  { %3036 = vmatmul.mubr.msk.f32.gmra.mrb[38].mxu0 %vm214_vm2, %v3476_v17 }
 0xbb8   :  { %v3034_v6 = vpop.f32.mrb[36].mxu0 }
 0xbb9   :  { %v2390_v35 = vadd.f32 %v3034_v6, %v3485_v22  ;;  %v2384_v14 = vpop.f32.mrb[37].mxu0 }
 0xbba   :  { %v2385_v0 = vadd.f32 %v2384_v14, %v3487_v23 }
 0xbbb   :  { %v2404_v1 = vmax.f32 %v2390_v35, 0.0 }
 0xbbc   :  { %v2403_v62 = vmax.f32 %v2385_v0, 0.0  ;;  %v3037_v44 = vpop.f32.mrb[38].mxu0 }
 0xbbd   :  { %v2400_v63 = vadd.f32 %v3037_v44, %v3491_v29  ;;  %v2394_v46 = vpop.f32.mrb[39].mxu0 }
 0xbbe   :  { %v3156_v48 = vpack.c.bf16 %v2404_v1, %v2403_v62  ;;  %v2395_v15 = vadd.f32 %v2394_v46, %v3493_v32 }
 0xbbf   :  { %v2406_v54 = vmax.f32 %v2400_v63, 0.0 }
 0xbc0   :  { %v2405_v16 = vmax.f32 %v2395_v15, 0.0  ;;  %3157 = vmatpush3.bf16.msra.mxu1 %v3156_v48 }
 0xbc1   :  { %3158 = vmatprep.subr.bf16.mxu1 %v3217_v18 }
 0xbc2   :  { %v3159_v17 = vpack.c.bf16 %v2406_v54, %v2405_v16 }
 0xbc4   :  { %3160 = vmatpush3.bf16.msra.mxu1 %v3159_v17 }
 0xbc7   :  { %3047 = vmatmul.mubr.msk.f32.vlgmr.msra.gmra.mrb[38].mxu1 %vm214_vm2, %v3504_v42 }
 0xc9a   :  { %v2473_v22 = vpop.f32.mrb[38].mxu1 }
 0xc9b   :  { %v2474_v23 = vadd.f32 %v2473_v22, %v3586_v27  ;;  %v3048_v47 = vpop.f32.mrb[39].mxu1 }
 0xc9d   :  { %v2496_v29 = vrot.slane %v2474_v23, 1 }
 0xc9f   :  { %v2511_v32 = vsel %vm2510_vm0, %v2509_v30, %v2496_v29 }
 0xca0   :  { %2512 = vst [vmem:[#allocation5] sm:$0xff] %v2511_v32 }
 0xca1   :  { %3200 = shalt.err (!%p3197_p3)
}
 0xca2   :  { %s3201_s1 = scalar_lea.hbm %s3831_s9, 128 }
 0xca3   :  { %p3202_p4 = scmp.ne.s32.totalorder %s3831_s9, %s3201_s1  ;;  %p3205_p5 = scmp.lt.u32.totalorder %s3201_s1, %s3831_s9 }
 0xca5   :  { %p3207_p6 = pnand %p3205_p5, %p3202_p4 }
 0xca7   :  { %3210 = shalt.err (!%p3207_p6)
}
 0xca8   :  { %2522 = dma.vmem_to_hbm [thread:$0]  %s2520_s4, 128, %s3831_s9, [#allocation6]  }
 0xca9   :  { %3213 = dma.done.wait [#allocation6], 128  }
 0xcaa   :  { %3214 = vsyncadd [#allocation6], 4294967168 }
 0xcab   :  { %2526 = vsyncpa [#allocation6], 1 }

</bundles_post_ra>
